<compile_context>
chip_gen: v5e
topology: v5e:2x2
jax: 0.10.0
libtpu: 0.0.40
codegen_flags: <defaults>
</compile_context>

<pallas_src>
import functools

import jax
import jax.numpy as jnp
from jax.experimental import pallas as pl
from jax.experimental.pallas import tpu as pltpu

LEAKY_SLOPE = 0.2
BN_EPS = 1e-5
MAX_TM = 1024          # lane tile over the per-image spatial dim HW (sweep 512-2048)


def _cdiv(a, b):
    return (a + b - 1) // b


def _pick_tm(hw, batch):
    """Spatial (lane) tile size: a multiple of 128, or the full extent HW."""
    if hw % 128 != 0:
        return hw                                    # full-extent block (always legal)
    tm = min(MAX_TM, hw)
    if batch * _cdiv(hw, tm) < 2 and hw >= 256:
        tm = ((hw // 2 + 127) // 128) * 128          # keep >= 2 grid steps (v7x: 2 TCs)
    return tm


def _leaky_relu(x, slope):
    return jnp.where(x > 0, x, slope * x)


def _backbone(x, w1, b1, w2_bf16):
    """conv1(+bias) -> LeakyReLU -> conv2 on a (C_in, TM) tile -> (C2, TM) f32.

    Shared by Stage A and Stage B so BN statistics and BN application see bit-identical
    conv2 activations.
    """
    cin = x.shape[0]
    # conv1: K = cin is tiny -> unrolled VPU broadcast-FMAs (frees the MXU slot).
    acc = w1[:, 0:1] * x[0:1, :]
    for c in range(1, cin):
        acc = acc + w1[:, c:c + 1] * x[c:c + 1, :]
    h1 = _leaky_relu(acc + b1, LEAKY_SLOPE)                       # (ndf, TM) f32
    # conv2: bf16 MXU operands, f32 accumulation.
    return jnp.dot(w2_bf16, h1.astype(jnp.bfloat16),
                   preferred_element_type=jnp.float32)            # (C2, TM) f32


# --------------------------------------------------------------------------------------
# Stage A: backbone + per-tile BN partial statistics (only output)
# --------------------------------------------------------------------------------------

def _stage_a_kernel(x_ref, w1_ref, b1_ref, w2_ref, stats_ref, *, hw, tm):
    i = pl.program_id(1)
    h2 = _backbone(x_ref[0].astype(jnp.float32),
                   w1_ref[...], b1_ref[...], w2_ref[...])

    def write_stats(vals):
        s1 = jnp.sum(vals, axis=1, keepdims=True)                 # (C2, 1)
        s2 = jnp.sum(vals * vals, axis=1, keepdims=True)          # (C2, 1)
        stats_ref[0, 0] = jnp.concatenate([s1, s2], axis=1)       # (C2, 2)

    if hw % tm == 0:
        write_stats(h2)                    # no ragged tiles: no mask work at all
    else:
        last = pl.num_programs(1) - 1

        @pl.when(i != last)
        def _():
            write_stats(h2)

        @pl.when(i == last)
        def _():
            col = jax.lax.broadcasted_iota(jnp.int32, h2.shape, 1) + i * tm
            write_stats(jnp.where(col < hw, h2, 0.0))


def stage_a(x3, w1, b1, w2, tm):
    B, cin, hw = x3.shape
    ndf = w1.shape[0]
    c2 = w2.shape[0]
    ntiles = _cdiv(hw, tm)
    return pl.pallas_call(
        functools.partial(_stage_a_kernel, hw=hw, tm=tm),
        grid=(B, ntiles),
        in_specs=[
            pl.BlockSpec((1, cin, tm), lambda b, i: (b, 0, i)),
            pl.BlockSpec((ndf, cin), lambda b, i: (0, 0)),
            pl.BlockSpec((ndf, 1), lambda b, i: (0, 0)),
            pl.BlockSpec((c2, ndf), lambda b, i: (0, 0)),
        ],
        out_specs=pl.BlockSpec((1, 1, c2, 2), lambda b, i: (b, i, 0, 0)),
        out_shape=jax.ShapeDtypeStruct((B, ntiles, c2, 2), jnp.float32),
        compiler_params=pltpu.CompilerParams(
            dimension_semantics=("parallel", "parallel")),
    )(x3, w1, b1, w2)


def bn_scale_shift(stats, gamma, beta, m_total, eps=BN_EPS):
    """Tiny cross-tile finalize (B*ntiles x C2 x 2 elements) in plain JAX."""
    total = jnp.sum(stats[..., 0], axis=(0, 1))                   # (C2,)
    total_sq = jnp.sum(stats[..., 1], axis=(0, 1))
    mean = total / m_total
    var = jnp.maximum(total_sq / m_total - mean * mean, 0.0)      # biased variance
    scale = gamma / jnp.sqrt(var + eps)
    shift = beta - mean * scale
    c2 = stats.shape[2]
    return scale.reshape(c2, 1), shift.reshape(c2, 1)


# --------------------------------------------------------------------------------------
# Stage B: recompute backbone -> BN-apply -> LeakyReLU -> conv3 (lane-dense (1, TM) rows)
# --------------------------------------------------------------------------------------

def _stage_b_kernel(x_ref, w1_ref, b1_ref, w2_ref, scale_ref, shift_ref, w3_ref, o_ref):
    h2 = _backbone(x_ref[0].astype(jnp.float32),
                   w1_ref[...], b1_ref[...], w2_ref[...])
    y = _leaky_relu(h2 * scale_ref[...] + shift_ref[...], LEAKY_SLOPE)
    # conv3: single output channel -> VPU multiply + sublane reduce; (1, TM) lane-dense.
    o_ref[0] = jnp.sum(y * w3_ref[...], axis=0, keepdims=True)


def stage_b(x3, w1, b1, w2, scale, shift, w3, tm):
    B, cin, hw = x3.shape
    ndf = w1.shape[0]
    c2 = w2.shape[0]
    ntiles = _cdiv(hw, tm)
    return pl.pallas_call(
        _stage_b_kernel,
        grid=(B, ntiles),
        in_specs=[
            pl.BlockSpec((1, cin, tm), lambda b, i: (b, 0, i)),
            pl.BlockSpec((ndf, cin), lambda b, i: (0, 0)),
            pl.BlockSpec((ndf, 1), lambda b, i: (0, 0)),
            pl.BlockSpec((c2, ndf), lambda b, i: (0, 0)),
            pl.BlockSpec((c2, 1), lambda b, i: (0, 0)),
            pl.BlockSpec((c2, 1), lambda b, i: (0, 0)),
            pl.BlockSpec((c2, 1), lambda b, i: (0, 0)),
        ],
        out_specs=pl.BlockSpec((1, 1, tm), lambda b, i: (b, 0, i)),
        out_shape=jax.ShapeDtypeStruct((B, 1, hw), jnp.float32),
        compiler_params=pltpu.CompilerParams(
            dimension_semantics=("parallel", "parallel")),
    )(x3, w1, b1, w2, scale, shift, w3)


# --------------------------------------------------------------------------------------
# Parameters & forward
# --------------------------------------------------------------------------------------

def init_params(key, input_nc, ndf):
    """PyTorch-style init (N(0, 0.02)); weights kept in (C_out, C_in) channel-matmul layout."""
    k1, k2, k3, kb = jax.random.split(key, 4)
    w1_t = jax.random.normal(k1, (ndf, input_nc, 1, 1), jnp.float32) * 0.02
    w2_t = jax.random.normal(k2, (ndf * 2, ndf, 1, 1), jnp.float32) * 0.02
    w3_t = jax.random.normal(k3, (1, ndf * 2, 1, 1), jnp.float32) * 0.02
    b1 = jax.random.normal(kb, (ndf,), jnp.float32) * 0.02
    return {
        "w1": w1_t[:, :, 0, 0],                                   # (ndf, cin) f32
        "b1": b1.reshape(ndf, 1),                                 # (ndf, 1) f32
        "w2": w2_t[:, :, 0, 0].astype(jnp.bfloat16),              # (2*ndf, ndf) bf16 MXU
        "w3": w3_t[:, :, 0, 0].reshape(ndf * 2, 1),               # (2*ndf, 1) f32 column
        "gamma": jnp.ones((ndf * 2,), jnp.float32),
        "beta": jnp.zeros((ndf * 2,), jnp.float32),
    }


def pixel_discriminator_forward(params, x_nchw):
    """Input NCHW, output NCHW (B, 1, H, W) -- matches PyTorch PixelDiscriminator."""
    B, cin, H, W = x_nchw.shape
    hw = H * W
    x3 = x_nchw.reshape(B, cin, hw).astype(jnp.float32)           # contiguous: free reshape
    tm = _pick_tm(hw, B)

    stats = stage_a(x3, params["w1"], params["b1"], params["w2"], tm)
    scale, shift = bn_scale_shift(stats, params["gamma"], params["beta"], B * hw)
    out = stage_b(x3, params["w1"], params["b1"], params["w2"],
                  scale, shift, params["w3"], tm)                 # (B, 1, HW)
    return out.reshape(B, 1, H, W)


def reference_forward(params, x_nchw):
    """Pure-JAX f32 reference (same weights) for a tolerance check."""
    B, cin, H, W = x_nchw.shape
    x = x_nchw.reshape(B, cin, H * W).astype(jnp.float32)
    h1 = jnp.einsum("oc,bcm->bom", params["w1"], x) + params["b1"][None]
    h1 = jnp.where(h1 > 0, h1, LEAKY_SLOPE * h1)
    h2 = jnp.einsum("oc,bcm->bom", params["w2"].astype(jnp.float32), h1)
    mean = h2.mean(axis=(0, 2))
    var = h2.var(axis=(0, 2))
    y = (h2 - mean[None, :, None]) / jnp.sqrt(var[None, :, None] + BN_EPS)
    y = y * params["gamma"][None, :, None] + params["beta"][None, :, None]
    y = jnp.where(y > 0, y, LEAKY_SLOPE * y)
    o = jnp.einsum("c,bcm->bm", params["w3"][:, 0], y)
    return o.reshape(B, 1, H, W)


if __name__ == "__main__":
    key = jax.random.PRNGKey(0)
    k_param, k_x = jax.random.split(key)

    # Module defaults: input_nc=3, ndf=64 -> channels 3 -> 64 -> 128 -> 1.
    input_nc, ndf = 3, 64
    B, H, W = 2, 16, 16

    params = init_params(k_param, input_nc, ndf)
    x = jax.random.normal(k_x, (B, input_nc, H, W), jnp.float32)  # NCHW

    fwd = jax.jit(pixel_discriminator_forward)
    out = jax.block_until_ready(fwd(params, x))

    assert out.shape == (B, 1, H, W), out.shape
    assert bool(jnp.all(jnp.isfinite(out)))

    ref = reference_forward(params, x)
    assert bool(jnp.allclose(out, ref, atol=5e-2, rtol=5e-2)), (
        float(jnp.max(jnp.abs(out - ref))))

    print("KERNEL_OK")
</pallas_src>

<mosaic_0001>
module attributes {stable_mosaic.version = 11 : i64} {
  func.func @_stage_a_kernel(%arg0: i32, %arg1: i32, %arg2: memref<1x3x256xf32, #tpu.memory_space<vmem>>, %arg3: memref<64x3xf32, #tpu.memory_space<vmem>>, %arg4: memref<64x1xf32, #tpu.memory_space<vmem>>, %arg5: memref<128x64xbf16, #tpu.memory_space<vmem>>, %arg6: memref<1x1x128x2xf32, #tpu.memory_space<vmem>>) attributes {dimension_semantics = [#tpu.dimension_semantics<parallel>, #tpu.dimension_semantics<parallel>], iteration_bounds = array<i64: 2, 1>, scalar_prefetch = 0 : i64, scratch_operands = 0 : i64, tpu.core_type = #tpu.core_type<tc>, window_params = [{transform_indices = @transform_0, window_bounds = array<i64: 1, 3, 256>}, {pipeline_mode = #tpu.pipeline_mode<synchronous>, transform_indices = @transform_1, window_bounds = array<i64: 64, 3>}, {pipeline_mode = #tpu.pipeline_mode<synchronous>, transform_indices = @transform_2, window_bounds = array<i64: 64, 1>}, {pipeline_mode = #tpu.pipeline_mode<synchronous>, transform_indices = @transform_3, window_bounds = array<i64: 128, 64>}, {transform_indices = @transform_4, window_bounds = array<i64: 1, 1, 128, 2>}]} {
    %c0 = arith.constant 0 : index
    %c0_0 = arith.constant 0 : index
    %c0_1 = arith.constant 0 : index
    %0 = vector.load %arg2[%c0, %c0_0, %c0_1] : memref<1x3x256xf32, #tpu.memory_space<vmem>>, vector<1x3x256xf32>
    %1 = vector.shape_cast %0 : vector<1x3x256xf32> to vector<3x256xf32>
    %c0_2 = arith.constant 0 : index
    %c0_3 = arith.constant 0 : index
    %2 = vector.load %arg3[%c0_2, %c0_3] : memref<64x3xf32, #tpu.memory_space<vmem>>, vector<64x3xf32>
    %c0_4 = arith.constant 0 : index
    %c0_5 = arith.constant 0 : index
    %3 = vector.load %arg4[%c0_4, %c0_5] : memref<64x1xf32, #tpu.memory_space<vmem>>, vector<64x1xf32>
    %c0_6 = arith.constant 0 : index
    %c0_7 = arith.constant 0 : index
    %4 = vector.load %arg5[%c0_6, %c0_7] : memref<128x64xbf16, #tpu.memory_space<vmem>>, vector<128x64xbf16>
    %5 = vector.extract_strided_slice %2 {offsets = [0, 0], sizes = [64, 1], strides = [1, 1]} : vector<64x3xf32> to vector<64x1xf32>
    %6 = vector.extract_strided_slice %1 {offsets = [0, 0], sizes = [1, 256], strides = [1, 1]} : vector<3x256xf32> to vector<1x256xf32>
    %7 = vector.broadcast %5 : vector<64x1xf32> to vector<64x256xf32>
    %8 = vector.broadcast %6 : vector<1x256xf32> to vector<64x256xf32>
    %9 = arith.mulf %7, %8 : vector<64x256xf32>
    %10 = vector.extract_strided_slice %2 {offsets = [0, 1], sizes = [64, 1], strides = [1, 1]} : vector<64x3xf32> to vector<64x1xf32>
    %11 = vector.extract_strided_slice %1 {offsets = [1, 0], sizes = [1, 256], strides = [1, 1]} : vector<3x256xf32> to vector<1x256xf32>
    %12 = vector.broadcast %10 : vector<64x1xf32> to vector<64x256xf32>
    %13 = vector.broadcast %11 : vector<1x256xf32> to vector<64x256xf32>
    %14 = arith.mulf %12, %13 : vector<64x256xf32>
    %15 = arith.addf %9, %14 : vector<64x256xf32>
    %16 = vector.extract_strided_slice %2 {offsets = [0, 2], sizes = [64, 1], strides = [1, 1]} : vector<64x3xf32> to vector<64x1xf32>
    %17 = vector.extract_strided_slice %1 {offsets = [2, 0], sizes = [1, 256], strides = [1, 1]} : vector<3x256xf32> to vector<1x256xf32>
    %18 = vector.broadcast %16 : vector<64x1xf32> to vector<64x256xf32>
    %19 = vector.broadcast %17 : vector<1x256xf32> to vector<64x256xf32>
    %20 = arith.mulf %18, %19 : vector<64x256xf32>
    %21 = arith.addf %15, %20 : vector<64x256xf32>
    %22 = vector.broadcast %3 : vector<64x1xf32> to vector<64x256xf32>
    %23 = arith.addf %21, %22 : vector<64x256xf32>
    %cst = arith.constant 0.000000e+00 : f32
    %24 = vector.broadcast %cst : f32 to vector<64x256xf32>
    %25 = arith.cmpf ogt, %23, %24 : vector<64x256xf32>
    %cst_8 = arith.constant 2.000000e-01 : f32
    %26 = vector.broadcast %cst_8 : f32 to vector<64x256xf32>
    %27 = arith.mulf %26, %23 : vector<64x256xf32>
    %28 = arith.select %25, %23, %27 : vector<64x256xi1>, vector<64x256xf32>
    %29 = arith.truncf %28 : vector<64x256xf32> to vector<64x256xbf16>
    %cst_9 = arith.constant dense<0.000000e+00> : vector<128x256xf32>
    %30 = tpu.matmul %4, %29, %cst_9 {dimension_numbers = #tpu.dot_dimension_numbers<[1], [0], [0], [1], [0, 0, 1, 1], [], []>} : vector<128x64xbf16>, vector<64x256xbf16>, vector<128x256xf32> -> vector<128x256xf32>
    %cst_10 = arith.constant dense<0.000000e+00> : vector<128xf32>
    %31 = vector.multi_reduction <add>, %30, %cst_10 [1] : vector<128x256xf32> to vector<128xf32>
    %32 = vector.shape_cast %31 : vector<128xf32> to vector<128x1xf32>
    %33 = arith.mulf %30, %30 : vector<128x256xf32>
    %cst_11 = arith.constant dense<0.000000e+00> : vector<128xf32>
    %34 = vector.multi_reduction <add>, %33, %cst_11 [1] : vector<128x256xf32> to vector<128xf32>
    %35 = vector.shape_cast %34 : vector<128xf32> to vector<128x1xf32>
    %36 = tpu.concatenate %32, %35 in 1 : vector<128x1xf32>, vector<128x1xf32> -> vector<128x2xf32>
    %c0_12 = arith.constant 0 : index
    %c0_13 = arith.constant 0 : index
    %c0_14 = arith.constant 0 : index
    %c0_15 = arith.constant 0 : index
    %37 = vector.load %arg6[%c0_12, %c0_13, %c0_14, %c0_15] : memref<1x1x128x2xf32, #tpu.memory_space<vmem>>, vector<1x1x128x2xf32>
    %38 = vector.shape_cast %37 : vector<1x1x128x2xf32> to vector<128x2xf32>
    %39 = vector.shape_cast %36 : vector<128x2xf32> to vector<1x1x128x2xf32>
    tpu.vector_store %arg6[%c0_12, %c0_13, %c0_14, %c0_15], %39 {strides = array<i32>} : memref<1x1x128x2xf32, #tpu.memory_space<vmem>>, vector<1x1x128x2xf32>,
    return
  }
  func.func @transform_0(%arg0: i32, %arg1: i32) -> (i32, i32, i32) {
    %c0_i32 = arith.constant 0 : i32
    %c0_i32_0 = arith.constant 0 : i32
    return %arg0, %c0_i32, %arg1 : i32, i32, i32
  }
  func.func @transform_1(%arg0: i32, %arg1: i32) -> (i32, i32) {
    %c0_i32 = arith.constant 0 : i32
    %c0_i32_0 = arith.constant 0 : i32
    %c0_i32_1 = arith.constant 0 : i32
    return %c0_i32, %c0_i32_0 : i32, i32
  }
  func.func @transform_2(%arg0: i32, %arg1: i32) -> (i32, i32) {
    %c0_i32 = arith.constant 0 : i32
    %c0_i32_0 = arith.constant 0 : i32
    %c0_i32_1 = arith.constant 0 : i32
    return %c0_i32, %c0_i32_0 : i32, i32
  }
  func.func @transform_3(%arg0: i32, %arg1: i32) -> (i32, i32) {
    %c0_i32 = arith.constant 0 : i32
    %c0_i32_0 = arith.constant 0 : i32
    %c0_i32_1 = arith.constant 0 : i32
    return %c0_i32, %c0_i32_0 : i32, i32
  }
  func.func @transform_4(%arg0: i32, %arg1: i32) -> (i32, i32, i32, i32) {
    %c0_i32 = arith.constant 0 : i32
    %c0_i32_0 = arith.constant 0 : i32
    %c0_i32_1 = arith.constant 0 : i32
    return %arg0, %arg1, %c0_i32, %c0_i32_0 : i32, i32, i32, i32
  }
}

module attributes {stable_mosaic.version = 11 : i64} {
  func.func @_stage_b_kernel(%arg0: i32, %arg1: i32, %arg2: memref<1x3x256xf32, #tpu.memory_space<vmem>>, %arg3: memref<64x3xf32, #tpu.memory_space<vmem>>, %arg4: memref<64x1xf32, #tpu.memory_space<vmem>>, %arg5: memref<128x64xbf16, #tpu.memory_space<vmem>>, %arg6: memref<128x1xf32, #tpu.memory_space<vmem>>, %arg7: memref<128x1xf32, #tpu.memory_space<vmem>>, %arg8: memref<128x1xf32, #tpu.memory_space<vmem>>, %arg9: memref<1x1x256xf32, #tpu.memory_space<vmem>>) attributes {dimension_semantics = [#tpu.dimension_semantics<parallel>, #tpu.dimension_semantics<parallel>], iteration_bounds = array<i64: 2, 1>, scalar_prefetch = 0 : i64, scratch_operands = 0 : i64, tpu.core_type = #tpu.core_type<tc>, window_params = [{transform_indices = @transform_0, window_bounds = array<i64: 1, 3, 256>}, {pipeline_mode = #tpu.pipeline_mode<synchronous>, transform_indices = @transform_1, window_bounds = array<i64: 64, 3>}, {pipeline_mode = #tpu.pipeline_mode<synchronous>, transform_indices = @transform_2, window_bounds = array<i64: 64, 1>}, {pipeline_mode = #tpu.pipeline_mode<synchronous>, transform_indices = @transform_3, window_bounds = array<i64: 128, 64>}, {pipeline_mode = #tpu.pipeline_mode<synchronous>, transform_indices = @transform_4, window_bounds = array<i64: 128, 1>}, {pipeline_mode = #tpu.pipeline_mode<synchronous>, transform_indices = @transform_5, window_bounds = array<i64: 128, 1>}, {pipeline_mode = #tpu.pipeline_mode<synchronous>, transform_indices = @transform_6, window_bounds = array<i64: 128, 1>}, {transform_indices = @transform_7, window_bounds = array<i64: 1, 1, 256>}]} {
    %c0 = arith.constant 0 : index
    %c0_0 = arith.constant 0 : index
    %c0_1 = arith.constant 0 : index
    %0 = vector.load %arg2[%c0, %c0_0, %c0_1] : memref<1x3x256xf32, #tpu.memory_space<vmem>>, vector<1x3x256xf32>
    %1 = vector.shape_cast %0 : vector<1x3x256xf32> to vector<3x256xf32>
    %c0_2 = arith.constant 0 : index
    %c0_3 = arith.constant 0 : index
    %2 = vector.load %arg3[%c0_2, %c0_3] : memref<64x3xf32, #tpu.memory_space<vmem>>, vector<64x3xf32>
    %c0_4 = arith.constant 0 : index
    %c0_5 = arith.constant 0 : index
    %3 = vector.load %arg4[%c0_4, %c0_5] : memref<64x1xf32, #tpu.memory_space<vmem>>, vector<64x1xf32>
    %c0_6 = arith.constant 0 : index
    %c0_7 = arith.constant 0 : index
    %4 = vector.load %arg5[%c0_6, %c0_7] : memref<128x64xbf16, #tpu.memory_space<vmem>>, vector<128x64xbf16>
    %5 = vector.extract_strided_slice %2 {offsets = [0, 0], sizes = [64, 1], strides = [1, 1]} : vector<64x3xf32> to vector<64x1xf32>
    %6 = vector.extract_strided_slice %1 {offsets = [0, 0], sizes = [1, 256], strides = [1, 1]} : vector<3x256xf32> to vector<1x256xf32>
    %7 = vector.broadcast %5 : vector<64x1xf32> to vector<64x256xf32>
    %8 = vector.broadcast %6 : vector<1x256xf32> to vector<64x256xf32>
    %9 = arith.mulf %7, %8 : vector<64x256xf32>
    %10 = vector.extract_strided_slice %2 {offsets = [0, 1], sizes = [64, 1], strides = [1, 1]} : vector<64x3xf32> to vector<64x1xf32>
    %11 = vector.extract_strided_slice %1 {offsets = [1, 0], sizes = [1, 256], strides = [1, 1]} : vector<3x256xf32> to vector<1x256xf32>
    %12 = vector.broadcast %10 : vector<64x1xf32> to vector<64x256xf32>
    %13 = vector.broadcast %11 : vector<1x256xf32> to vector<64x256xf32>
    %14 = arith.mulf %12, %13 : vector<64x256xf32>
    %15 = arith.addf %9, %14 : vector<64x256xf32>
    %16 = vector.extract_strided_slice %2 {offsets = [0, 2], sizes = [64, 1], strides = [1, 1]} : vector<64x3xf32> to vector<64x1xf32>
    %17 = vector.extract_strided_slice %1 {offsets = [2, 0], sizes = [1, 256], strides = [1, 1]} : vector<3x256xf32> to vector<1x256xf32>
    %18 = vector.broadcast %16 : vector<64x1xf32> to vector<64x256xf32>
    %19 = vector.broadcast %17 : vector<1x256xf32> to vector<64x256xf32>
    %20 = arith.mulf %18, %19 : vector<64x256xf32>
    %21 = arith.addf %15, %20 : vector<64x256xf32>
    %22 = vector.broadcast %3 : vector<64x1xf32> to vector<64x256xf32>
    %23 = arith.addf %21, %22 : vector<64x256xf32>
    %cst = arith.constant 0.000000e+00 : f32
    %24 = vector.broadcast %cst : f32 to vector<64x256xf32>
    %25 = arith.cmpf ogt, %23, %24 : vector<64x256xf32>
    %cst_8 = arith.constant 2.000000e-01 : f32
    %26 = vector.broadcast %cst_8 : f32 to vector<64x256xf32>
    %27 = arith.mulf %26, %23 : vector<64x256xf32>
    %28 = arith.select %25, %23, %27 : vector<64x256xi1>, vector<64x256xf32>
    %29 = arith.truncf %28 : vector<64x256xf32> to vector<64x256xbf16>
    %cst_9 = arith.constant dense<0.000000e+00> : vector<128x256xf32>
    %30 = tpu.matmul %4, %29, %cst_9 {dimension_numbers = #tpu.dot_dimension_numbers<[1], [0], [0], [1], [0, 0, 1, 1], [], []>} : vector<128x64xbf16>, vector<64x256xbf16>, vector<128x256xf32> -> vector<128x256xf32>
    %c0_10 = arith.constant 0 : index
    %c0_11 = arith.constant 0 : index
    %31 = vector.load %arg6[%c0_10, %c0_11] : memref<128x1xf32, #tpu.memory_space<vmem>>, vector<128x1xf32>
    %32 = vector.broadcast %31 : vector<128x1xf32> to vector<128x256xf32>
    %33 = arith.mulf %30, %32 : vector<128x256xf32>
    %c0_12 = arith.constant 0 : index
    %c0_13 = arith.constant 0 : index
    %34 = vector.load %arg7[%c0_12, %c0_13] : memref<128x1xf32, #tpu.memory_space<vmem>>, vector<128x1xf32>
    %35 = vector.broadcast %34 : vector<128x1xf32> to vector<128x256xf32>
    %36 = arith.addf %33, %35 : vector<128x256xf32>
    %cst_14 = arith.constant 0.000000e+00 : f32
    %37 = vector.broadcast %cst_14 : f32 to vector<128x256xf32>
    %38 = arith.cmpf ogt, %36, %37 : vector<128x256xf32>
    %cst_15 = arith.constant 2.000000e-01 : f32
    %39 = vector.broadcast %cst_15 : f32 to vector<128x256xf32>
    %40 = arith.mulf %39, %36 : vector<128x256xf32>
    %41 = arith.select %38, %36, %40 : vector<128x256xi1>, vector<128x256xf32>
    %c0_16 = arith.constant 0 : index
    %c0_17 = arith.constant 0 : index
    %42 = vector.load %arg8[%c0_16, %c0_17] : memref<128x1xf32, #tpu.memory_space<vmem>>, vector<128x1xf32>
    %43 = vector.broadcast %42 : vector<128x1xf32> to vector<128x256xf32>
    %44 = arith.mulf %41, %43 : vector<128x256xf32>
    %cst_18 = arith.constant dense<0.000000e+00> : vector<256xf32>
    %45 = vector.multi_reduction <add>, %44, %cst_18 [0] : vector<128x256xf32> to vector<256xf32>
    %46 = vector.shape_cast %45 : vector<256xf32> to vector<1x256xf32>
    %c0_19 = arith.constant 0 : index
    %c0_20 = arith.constant 0 : index
    %c0_21 = arith.constant 0 : index
    %47 = vector.load %arg9[%c0_19, %c0_20, %c0_21] : memref<1x1x256xf32, #tpu.memory_space<vmem>>, vector<1x1x256xf32>
    %48 = vector.shape_cast %47 : vector<1x1x256xf32> to vector<1x256xf32>
    %49 = vector.shape_cast %46 : vector<1x256xf32> to vector<1x1x256xf32>
    tpu.vector_store %arg9[%c0_19, %c0_20, %c0_21], %49 {strides = array<i32>} : memref<1x1x256xf32, #tpu.memory_space<vmem>>, vector<1x1x256xf32>,
    return
  }
  func.func @transform_0(%arg0: i32, %arg1: i32) -> (i32, i32, i32) {
    %c0_i32 = arith.constant 0 : i32
    %c0_i32_0 = arith.constant 0 : i32
    return %arg0, %c0_i32, %arg1 : i32, i32, i32
  }
  func.func @transform_1(%arg0: i32, %arg1: i32) -> (i32, i32) {
    %c0_i32 = arith.constant 0 : i32
    %c0_i32_0 = arith.constant 0 : i32
    %c0_i32_1 = arith.constant 0 : i32
    return %c0_i32, %c0_i32_0 : i32, i32
  }
  func.func @transform_2(%arg0: i32, %arg1: i32) -> (i32, i32) {
    %c0_i32 = arith.constant 0 : i32
    %c0_i32_0 = arith.constant 0 : i32
    %c0_i32_1 = arith.constant 0 : i32
    return %c0_i32, %c0_i32_0 : i32, i32
  }
  func.func @transform_3(%arg0: i32, %arg1: i32) -> (i32, i32) {
    %c0_i32 = arith.constant 0 : i32
    %c0_i32_0 = arith.constant 0 : i32
    %c0_i32_1 = arith.constant 0 : i32
    return %c0_i32, %c0_i32_0 : i32, i32
  }
  func.func @transform_4(%arg0: i32, %arg1: i32) -> (i32, i32) {
    %c0_i32 = arith.constant 0 : i32
    %c0_i32_0 = arith.constant 0 : i32
    %c0_i32_1 = arith.constant 0 : i32
    return %c0_i32, %c0_i32_0 : i32, i32
  }
  func.func @transform_5(%arg0: i32, %arg1: i32) -> (i32, i32) {
    %c0_i32 = arith.constant 0 : i32
    %c0_i32_0 = arith.constant 0 : i32
    %c0_i32_1 = arith.constant 0 : i32
    return %c0_i32, %c0_i32_0 : i32, i32
  }
  func.func @transform_6(%arg0: i32, %arg1: i32) -> (i32, i32) {
    %c0_i32 = arith.constant 0 : i32
    %c0_i32_0 = arith.constant 0 : i32
    %c0_i32_1 = arith.constant 0 : i32
    return %c0_i32, %c0_i32_0 : i32, i32
  }
  func.func @transform_7(%arg0: i32, %arg1: i32) -> (i32, i32, i32) {
    %c0_i32 = arith.constant 0 : i32
    %c0_i32_0 = arith.constant 0 : i32
    return %arg0, %c0_i32, %arg1 : i32, i32, i32
  }
}

</mosaic_0001>

<bundles_post_ra>
// kernel: pixel_discriminator_forward.2
= control target key start
LH: loop header
LB: loop body
LE: loop exit
PB: predicated region body
PF: predicated region fallthrough
CT: control target
= control target key end

     0   :  { %s1176_s15 = smov 0   ;;  %s1178_s16 = smov 0   ;;  %s1451_s0 = inlined_call_operand.vmem [shape: f32[2,3,256], index: 0, kind: input, shape index: {}]   ;;  %s1452_s1 = inlined_call_operand.vmem [shape: f32[64,3], index: 1, kind: input, shape index: {}]   ;;  %s1453_s2 = inlined_call_operand.vmem [shape: f32[64,1], index: 2, kind: input, shape index: {}]   ;;  %s1454_s3 = inlined_call_operand.vmem [shape: bf16[128,64], index: 3, kind: input, shape index: {}]   ;;  %s1455_s4 = inlined_call_operand.vmem [shape: f32[2,1,128,2], index: 4, kind: output, shape index: {}]  }
   0x1   :  { %s1180_s17 = smov 0  }
   0x2 LB: > { %s26_s18 = sadd.s32 1, %s1142_s16  ;;  %p1003_p0 = scmp.ge.s32.totalorder %s1146_s17, 1  ;;  %s1146_s17 = sphi %s1180_s17, %s14_s17   ;;  %s1142_s16 = sphi %s1178_s16, %s1457_s16   ;;  %s1138_s15 = sphi %s1176_s15, %s1456_s15  }
   0x3   : > { %p28_p1 = scmp.ge.s32.totalorder %s26_s18, 2  ;;  %p183_p2 = scmp.lt.s32.totalorder %s1146_s17, 3 }
   0x5   : > { %s1459_s18 = smov (%p28_p1, %s26_s18), 0  ;;  %p184_p3 = pnand %p1003_p0, %p183_p2 }
   0x6   : > { %p218_p4 = scmp.lt.s32.totalorder (!%p184_p3), %s1138_s15, 1 }
   0x7   : > { %187 = sbr.rel (%p184_p3) target bundleno = 569 (0x239), region = 36 }
   0xc   : > { %v244_v0 = vld [vmem:[%s1452_s1 + $0x30] sm:$0xff]  ;;  %v241_v1 = vld [vmem:[%s1452_s1 + $0x18] sm:$0xff]  ;;  %v1148_v2 = vmov 2   ;;  %v1149_v3 = vmov 1   ;;  %v243_v5 = vld [vmem:[%s1452_s1 + $0x28] sm:$0xff]  ;;  %v1150_v8 = vmov 0  }
   0xd   : > { %1114 = vset.pattern.permute.xlu0 %v1148_v2  ;;  %1104 = vset.pattern.permute.xlu2 %v1148_v2  ;;  %v245_v4 = vld [vmem:[%s1452_s1 + $0x38] sm:$0xff]  ;;  %v242_v6 = vld [vmem:[%s1452_s1 + $0x20] sm:$0xff]  ;;  %v252_v9 = vld [vmem:[%s1453_s2 + $0x30] sm:$0xff]  ;;  %s1461_s15 = smov (!%p218_p4, %s1138_s15), 1 }
   0xe   : > { %1103 = vset.pattern.permute.xlu1 %v1149_v3  ;;  %428 = vperm.xlu2 %1104, %v244_v0   ;;  %v238_v7 = vld [vmem:[%s1452_s1] sm:$0xff]  ;;  %v253_v10 = vld [vmem:[%s1453_s2 + $0x38] sm:$0xff]  ;;  %v240_v11 = vld [vmem:[%s1452_s1 + $0x10] sm:$0xff]  ;;  %s1058_s29 = sshll.u32 %s1461_s15, 3  ;;  %s1059_s27 = sshll.u32 %s1461_s15, 7 }
   0xf   : > { %358 = vperm.xlu1 %1103, %v244_v0   ;;  %416 = vperm.xlu0 %1114, %v241_v1   ;;  %v249_v12 = vld [vmem:[%s1453_s2 + $0x18] sm:$0xff]  ;;  %v250_v13 = vld [vmem:[%s1453_s2 + $0x20] sm:$0xff]  ;;  %v251_v14 = vld [vmem:[%s1453_s2 + $0x28] sm:$0xff]  ;;  %s225_s6 = scalar_lea.vmem %s1451_s0, %s1058_s29  ;;  %s1392_s30 = scalar_lea.vmem %s1455_s4, %s1059_s27 }
  0x10   : > { %v239_v15 = vld [vmem:[%s1452_s1 + $0x8] sm:$0xff]  ;;  %v248_v16 = vld [vmem:[%s1453_s2 + $0x10] sm:$0xff]  ;;  %v246_v18 = vld [vmem:[%s1453_s2] sm:$0xff] }
  0x11   : > { %v247_v19 = vld [vmem:[%s1453_s2 + $0x8] sm:$0xff]  ;;  %v237_v30 = vld [vmem:[%s225_s6] sm:$0x77] }
  0x12   : > { %v365_v32 = vperm.slane %v237_v30, 1  ;;  %v366_v33 = vperm.slane %v237_v30, 5  ;;  %v311_v34 = vperm.slane %v237_v30, 0  ;;  %v312_v35 = vperm.slane %v237_v30, 4 }
  0x13   : > { %v435_v36 = vperm.slane %v237_v30, 2  ;;  %v436_v37 = vperm.slane %v237_v30, 6 }
  0x14   : > { %v1264_v39 = vperm.slane %v365_v32, 1  ;;  %v1266_v40 = vperm.slane %v366_v33, 1  ;;  %v1268_v41 = vperm.slane %v311_v34, 0  ;;  %v1270_v42 = vperm.slane %v312_v35, 0 }
  0x15   : > { %v1276_v47 = vperm.slane %v435_v36, 2  ;;  %v1278_v48 = vperm.slane %v436_v37, 2 }
  0x16   : > { %432 = vperm.xlu2 %1104, %v245_v4  }
  0x17   : > { %362 = vperm.xlu1 %1103, %v245_v4   ;;  %1115 = vset.pattern.permute.xlu0 %v1149_v3 }
  0x18   : > { %354 = vperm.xlu0 %1115, %v243_v5  }
  0x1e   : > { %1106 = vset.pattern.permute.xlu2 %v1149_v3 }
  0x1f   : > { %1105 = vset.pattern.permute.xlu1 %v1150_v8  ;;  %350 = vperm.xlu2 %1106, %v242_v6  }
  0x20   : > { %297 = vperm.xlu1 %1105, %v243_v5   ;;  %334 = vperm.xlu0 %1115, %v238_v7  }
  0x27   : > { %1108 = vset.pattern.permute.xlu2 %v1148_v2 }
  0x28   : > { %1107 = vset.pattern.permute.xlu1 %v1148_v2  ;;  %1118 = vset.pattern.permute.xlu0 %v1150_v8 }
  0x29   : > { %420 = vperm.xlu1 %1107, %v242_v6   ;;  %424 = vperm.xlu2 %1108, %v243_v5  }
  0x2a   : > { %302 = vperm.xlu0 %1118, %v244_v0  }
  0x31   : > { %1109 = vset.pattern.permute.xlu1 %v1150_v8  ;;  %1110 = vset.pattern.permute.xlu2 %v1150_v8 }
  0x32   : > { %307 = vperm.xlu0 %1118, %v245_v4   ;;  %505 = vperm.xlu1 %1109, %v252_v9  }
  0x33   : > { %510 = vperm.xlu2 %1110, %v253_v10  }
  0x3a   : > { %292 = vperm.xlu0 %1118, %v242_v6   ;;  %287 = vperm.xlu1 %1109, %v241_v1  }
  0x3b   : > { %1111 = vset.pattern.permute.xlu2 %v1149_v3 }
  0x3c   : > { %342 = vperm.xlu2 %1111, %v240_v11  }
  0x42   : > { %282 = vperm.xlu0 %1118, %v240_v11   ;;  %1112 = vset.pattern.permute.xlu1 %v1149_v3 }
  0x43   : > { %346 = vperm.xlu1 %1112, %v241_v1  }
  0x44   : > { %1113 = vset.pattern.permute.xlu2 %v1148_v2 }
  0x45   : > { %412 = vperm.xlu2 %1113, %v240_v11  }
  0x4a   : > { %490 = vperm.xlu0 %1118, %v249_v12  }
  0x4b   : > { %1116 = vset.pattern.permute.xlu1 %v1150_v8 }
  0x4c   : > { %495 = vperm.xlu1 %1116, %v250_v13  }
  0x4d   : > { %1117 = vset.pattern.permute.xlu2 %v1150_v8 }
  0x4e   : > { %500 = vperm.xlu2 %1117, %v251_v14  }
  0x54   : > { %272 = vperm.xlu1 %1116, %v238_v7  }
  0x56   : > { %277 = vperm.xlu2 %1117, %v239_v15  }
  0x5c   : > { %1119 = vset.pattern.permute.xlu1 %v1149_v3 }
  0x5d   : > { %338 = vperm.xlu1 %1119, %v239_v15  }
  0x5e   : > { %1120 = vset.pattern.permute.xlu2 %v1148_v2 }
  0x5f   : > { %404 = vperm.xlu2 %1120, %v238_v7  }
  0x65   : > { %1121 = vset.pattern.permute.xlu1 %v1148_v2 }
  0x66   : > { %408 = vperm.xlu1 %1121, %v239_v15  }
  0x67   : > { %1122 = vset.pattern.permute.xlu2 %v1150_v8 }
  0x68   : > { %485 = vperm.xlu2 %1122, %v248_v16   ;;  %v429_v17 = vpop.permute.xlu2 %428 }
  0x69   : > { %v453_v53 = vmul.f32 %v1276_v47, %v429_v17  ;;  %v454_v54 = vmul.f32 %v1278_v48, %v429_v17 }
  0x6e   : > { %1123 = vset.pattern.permute.xlu1 %v1150_v8 }
  0x6f   : > { %475 = vperm.xlu1 %1123, %v246_v18  }
  0x70   : > { %v433_v20 = vpop.permute.xlu2 %432  ;;  %480 = vperm.xlu2 %1122, %v247_v19  }
  0x71   : > { %v455_v63 = vmul.f32 %v1276_v47, %v433_v20  ;;  %v456_v0 = vmul.f32 %v1278_v48, %v433_v20 }
  0x79   : > { %v1244_v21 = vpop.permute.xlu2 %350 }
  0x7a   : > { %v379_v37 = vmul.f32 %v1264_v39, %v1244_v21 }
  0x81   : > { %v359_v22 = vpop.permute.xlu1 %358  ;;  %v1246_v23 = vpop.permute.xlu0 %416 }
  0x82   : > { %v383_v49 = vmul.f32 %v1264_v39, %v359_v22  ;;  %v384_v50 = vmul.f32 %v1266_v40, %v359_v22 }
  0x83   : > { %v1248_v24 = vpop.permute.xlu2 %424 }
  0x84   : > { %v451_v34 = vmul.f32 %v1276_v47, %v1248_v24  ;;  %v452_v35 = vmul.f32 %v1278_v48, %v1248_v24 }
  0x89   : > { %v363_v25 = vpop.permute.xlu1 %362 }
  0x8a   : > { %v355_v26 = vpop.permute.xlu0 %354  ;;  %v385_v57 = vmul.f32 %v1264_v39, %v363_v25  ;;  %v386_v58 = vmul.f32 %v1266_v40, %v363_v25 }
  0x8b   : > { %v381_v16 = vmul.f32 %v1264_v39, %v355_v26  ;;  %v382_v17 = vmul.f32 %v1266_v40, %v355_v26 }
  0x8d   : > { %v511_v27 = vpop.permute.xlu2 %510 }
  0x92   : > { %v298_v28 = vpop.permute.xlu1 %297  ;;  %v1258_v29 = vpop.permute.xlu0 %334 }
  0x93   : > { %v327_v18 = vmul.f32 %v1268_v41, %v298_v28  ;;  %v328_v19 = vmul.f32 %v1270_v42, %v298_v28 }
  0x95   : > { %v397_v36 = vadd.f32 %v381_v16, %v327_v18  ;;  %v398_v26 = vadd.f32 %v382_v17, %v328_v19 }
  0x96   : > { %v1260_v31 = vpop.permute.xlu2 %342 }
  0x9b   : > { %v1262_v38 = vpop.permute.xlu1 %420 }
  0x9c   : > { %v303_v43 = vpop.permute.xlu0 %302 }
  0x9d   : > { %v329_v44 = vmul.f32 %v1268_v41, %v303_v43  ;;  %v330_v45 = vmul.f32 %v1270_v42, %v303_v43  ;;  %v380_v43 = vmul.f32 %v1266_v40, %v1244_v21  ;;  %v467_v21 = vadd.f32 %v451_v34, %v397_v36 }
  0x9f   : > { %v1274_v46 = vpop.permute.xlu2 %412  ;;  %v399_v51 = vadd.f32 %v383_v49, %v329_v44  ;;  %v400_v52 = vadd.f32 %v384_v50, %v330_v45 }
  0xa1   : > { %v469_v61 = vadd.f32 %v453_v53, %v399_v51  ;;  %v470_v62 = vadd.f32 %v454_v54, %v400_v52  ;;  %v447_v53 = vmul.f32 %v1276_v47, %v1246_v23  ;;  %v448_v54 = vmul.f32 %v1278_v48, %v1246_v23 }
  0xa4   : > { %v308_v55 = vpop.permute.xlu0 %307  ;;  %v506_v56 = vpop.permute.xlu1 %505 }
  0xa5   : > { %v331_v59 = vmul.f32 %v1268_v41, %v308_v55  ;;  %v332_v60 = vmul.f32 %v1270_v42, %v308_v55  ;;  %v525_v3 = vadd.f32 %v506_v56, %v469_v61  ;;  %v526_v4 = vadd.f32 %v506_v56, %v470_v62 }
  0xa6   : > { %v468_v55 = vadd.f32 %v452_v35, %v398_v26  ;;  %v376_v61 = vmul.f32 %v1266_v40, %v1260_v31 }
  0xa7   : > { %v401_v1 = vadd.f32 %v385_v57, %v331_v59  ;;  %v402_v2 = vadd.f32 %v386_v58, %v332_v60  ;;  %v557_v10 = vmul.f32 0.2, %v525_v3  ;;  %v558_v11 = vmul.f32 0.2, %v526_v4 }
  0xa8   : > { %v501_v5 = vpop.permute.xlu2 %500  ;;  %vm541_vm0 = vcmp.gt.f32.partialorder %v525_v3, 0.0  ;;  %vm542_vm1 = vcmp.gt.f32.partialorder %v526_v4, 0.0  ;;  %v375_v60 = vmul.f32 %v1264_v39, %v1260_v31  ;;  %v446_v31 = vmul.f32 %v1278_v48, %v1274_v46 }
  0xa9   : > { %v471_v6 = vadd.f32 %v455_v63, %v401_v1  ;;  %v472_v7 = vadd.f32 %v456_v0, %v402_v2  ;;  %v573_v22 = vsel %vm541_vm0, %v525_v3, %v557_v10  ;;  %v523_v1 = vadd.f32 %v501_v5, %v467_v21 }
  0xaa   : > { %v524_v23 = vadd.f32 %v501_v5, %v468_v55  ;;  %vm625_vm0 = vcmask 523264  }
  0xab   : > { %v527_v8 = vadd.f32 %v511_v27, %v471_v6  ;;  %v528_v9 = vadd.f32 %v511_v27, %v472_v7  ;;  %v574_v27 = vsel %vm542_vm1, %v526_v4, %v558_v11  ;;  %v449_v4 = vmul.f32 %v1276_v47, %v1262_v38 }
  0xac   : > { %v293_v12 = vpop.permute.xlu0 %292  ;;  %v288_v13 = vpop.permute.xlu1 %287  ;;  %v450_v6 = vmul.f32 %v1278_v48, %v1262_v38  ;;  %v445_v7 = vmul.f32 %v1276_v47, %v1274_v46  ;;  %v555_v5 = vmul.f32 0.2, %v523_v1  ;;  %vm539_vm4 = vcmp.gt.f32.partialorder %v523_v1, 0.0 }
  0xad   : > { %vm543_vm2 = vcmp.gt.f32.partialorder %v527_v8, 0.0  ;;  %v559_v14 = vmul.f32 0.2, %v527_v8  ;;  %vm544_vm3 = vcmp.gt.f32.partialorder %v528_v9, 0.0  ;;  %v560_v15 = vmul.f32 0.2, %v528_v9 }
  0xae   : > { %v325_v44 = vmul.f32 %v1268_v41, %v293_v12  ;;  %v326_v45 = vmul.f32 %v1270_v42, %v293_v12  ;;  %v323_v24 = vmul.f32 %v1268_v41, %v288_v13  ;;  %v324_v50 = vmul.f32 %v1270_v42, %v288_v13 }
  0xaf   : > { %v575_v25 = vsel %vm543_vm2, %v527_v8, %v559_v14  ;;  %v576_v30 = vsel %vm544_vm3, %v528_v9, %v560_v15  ;;  %v556_v13 = vmul.f32 0.2, %v524_v23  ;;  %vm540_vm5 = vcmp.gt.f32.partialorder %v524_v23, 0.0 }
  0xb0   : > { %v1294_v20 = vpop.permute.xlu2 %277  ;;  %v583_v32 = vpack.c.bf16 %v575_v25, %v573_v22  ;;  %v584_v33 = vpack.c.bf16 %v576_v30, %v574_v27  ;;  %v395_v62 = vadd.f32 %v379_v37, %v325_v44  ;;  %v396_v63 = vadd.f32 %v380_v43, %v326_v45 }
  0xb1   : > { %vm876_vm1 = vcmask 7168   ;;  %vm893_vm2 = vcmask 15360  }
  0xb2   : > { %654 = vmatpush.bf16.msra.mxu0 %v583_v32  ;;  %1068 = vmatpush.bf16.msra.mxu2 %v583_v32  ;;  %v465_v11 = vadd.f32 %v449_v4, %v395_v62  ;;  %v466_v12 = vadd.f32 %v450_v6, %v396_v63  ;;  %v571_v32 = vsel %vm539_vm4, %v523_v1, %v555_v5 }
  0xb3   : > { %703 = vmatpush.bf16.msra.mxu1 %v584_v33  ;;  %1072 = vmatpush.bf16.msra.mxu3 %v584_v33  ;;  %v572_v33 = vsel %vm540_vm5, %v524_v23, %v556_v13  ;;  %v371_v23 = vmul.f32 %v1264_v39, %v1258_v29 }
  0xb4   : > { %v283_v28 = vpop.permute.xlu0 %282 }
  0xb5   : > { %v347_v49 = vpop.permute.xlu1 %346  ;;  %v321_v56 = vmul.f32 %v1268_v41, %v283_v28  ;;  %v322_v57 = vmul.f32 %v1270_v42, %v283_v28 }
  0xb6   : > { %v377_v51 = vmul.f32 %v1264_v39, %v347_v49  ;;  %v378_v52 = vmul.f32 %v1266_v40, %v347_v49 }
  0xb7   : > { %v391_v8 = vadd.f32 %v375_v60, %v321_v56  ;;  %v392_v9 = vadd.f32 %v376_v61, %v322_v57  ;;  %v319_v56 = vmul.f32 %v1268_v41, %v1294_v20  ;;  %v320_v57 = vmul.f32 %v1270_v42, %v1294_v20 }
  0xb8   : > { %v393_v58 = vadd.f32 %v377_v51, %v323_v24  ;;  %v394_v59 = vadd.f32 %v378_v52, %v324_v50 }
  0xb9   : > { %v1320_v0 = vpop.permute.xlu2 %404  ;;  %v461_v38 = vadd.f32 %v445_v7, %v391_v8  ;;  %v462_v19 = vadd.f32 %v446_v31, %v392_v9 }
  0xba   : > { %v463_v2 = vadd.f32 %v447_v53, %v393_v58  ;;  %v464_v3 = vadd.f32 %v448_v54, %v394_v59 }
  0xbc   : > { %v491_v10 = vpop.permute.xlu0 %490 }
  0xbd   : > { %v519_v14 = vadd.f32 %v491_v10, %v463_v2  ;;  %v520_v15 = vadd.f32 %v491_v10, %v464_v3  ;;  %v372_v2 = vmul.f32 %v1266_v40, %v1258_v29 }
  0xbe   : > { %v496_v16 = vpop.permute.xlu1 %495 }
  0xbf   : > { %v521_v17 = vadd.f32 %v496_v16, %v465_v11  ;;  %v522_v18 = vadd.f32 %v496_v16, %v466_v12  ;;  %v551_v46 = vmul.f32 0.2, %v519_v14  ;;  %v552_v27 = vmul.f32 0.2, %v520_v15 }
  0xc0   : > { %vm535_vm8 = vcmp.gt.f32.partialorder %v519_v14, 0.0  ;;  %vm536_vm9 = vcmp.gt.f32.partialorder %v520_v15, 0.0 }
  0xc1   : > { %v553_v22 = vmul.f32 0.2, %v521_v17  ;;  %v554_v25 = vmul.f32 0.2, %v522_v18  ;;  %vm537_vm6 = vcmp.gt.f32.partialorder %v521_v17, 0.0  ;;  %vm538_vm7 = vcmp.gt.f32.partialorder %v522_v18, 0.0 }
  0xc2   : > { %v486_v30 = vpop.permute.xlu2 %485  ;;  %v567_v24 = vsel %vm535_vm8, %v519_v14, %v551_v46  ;;  %v568_v52 = vsel %vm536_vm9, %v520_v15, %v552_v27  ;;  %v1067_v46 = vld [vmem:[%s1454_s3 + $0x38] sm:$0xff] }
  0xc3   : > { %v517_v34 = vadd.f32 %v486_v30, %v461_v38  ;;  %v518_v35 = vadd.f32 %v486_v30, %v462_v19  ;;  %v569_v36 = vsel %vm537_vm6, %v521_v17, %v553_v22  ;;  %v570_v26 = vsel %vm538_vm7, %v522_v18, %v554_v25  ;;  %v1060_v17 = vld [vmem:[%s1454_s3] sm:$0xff]  ;;  %v1061_v38 = vld [vmem:[%s1454_s3 + $0x8] sm:$0xff]  ;;  %v1062_v22 = vld [vmem:[%s1454_s3 + $0x10] sm:$0xff] }
  0xc4   : > { %v581_v28 = vpack.c.bf16 %v571_v32, %v569_v36  ;;  %v582_v37 = vpack.c.bf16 %v572_v33, %v570_v26  ;;  %v1064_v18 = vld [vmem:[%s1454_s3 + $0x20] sm:$0xff]  ;;  %v1065_v19 = vld [vmem:[%s1454_s3 + $0x28] sm:$0xff]  ;;  %v1066_v25 = vld [vmem:[%s1454_s3 + $0x30] sm:$0xff] }
  0xc5   : > { %v549_v43 = vmul.f32 0.2, %v517_v34  ;;  %v550_v44 = vmul.f32 0.2, %v518_v35  ;;  %vm533_vm10 = vcmp.gt.f32.partialorder %v517_v34, 0.0  ;;  %vm534_vm11 = vcmp.gt.f32.partialorder %v518_v35, 0.0 }
  0xc6   : > { %v273_v45 = vpop.permute.xlu1 %272  ;;  %655 = vmatpush.bf16.msra.mxu0 %v581_v28  ;;  %1069 = vmatpush.bf16.msra.mxu2 %v581_v28  ;;  %v1063_v27 = vld [vmem:[%s1454_s3 + $0x18] sm:$0xff] }
  0xc7   : > { %704 = vmatpush.bf16.msra.mxu1 %v582_v37  ;;  %1073 = vmatpush.bf16.msra.mxu3 %v582_v37  ;;  %v565_v49 = vsel %vm533_vm10, %v517_v34, %v549_v43  ;;  %v566_v51 = vsel %vm534_vm11, %v518_v35, %v550_v44  ;;  %v317_v58 = vmul.f32 %v1268_v41, %v273_v45 }
  0xc8   : > { %v579_v50 = vpack.c.bf16 %v567_v24, %v565_v49  ;;  %v580_v53 = vpack.c.bf16 %v568_v52, %v566_v51  ;;  %v318_v59 = vmul.f32 %v1270_v42, %v273_v45  ;;  %v441_v41 = vmul.f32 %v1276_v47, %v1320_v0 }
  0xc9   : > { %v442_v42 = vmul.f32 %v1278_v48, %v1320_v0  ;;  %v387_v20 = vadd.f32 %v371_v23, %v317_v58 }
  0xca   : > { %656 = vmatpush.bf16.msra.mxu0 %v579_v50  ;;  %1070 = vmatpush.bf16.msra.mxu2 %v579_v50  ;;  %v388_v6 = vadd.f32 %v372_v2, %v318_v59  ;;  %v481_v7 = vpop.permute.xlu2 %480 }
  0xcb   : > { %705 = vmatpush.bf16.msra.mxu1 %v580_v53  ;;  %1074 = vmatpush.bf16.msra.mxu3 %v580_v53  ;;  %v457_v9 = vadd.f32 %v441_v41, %v387_v20 }
  0xcc   : > { %v458_v10 = vadd.f32 %v442_v42, %v388_v6 }
  0xcf   : > { %v339_v54 = vpop.permute.xlu1 %338 }
  0xd0   : > { %v373_v21 = vmul.f32 %v1264_v39, %v339_v54  ;;  %v374_v55 = vmul.f32 %v1266_v40, %v339_v54 }
  0xd2   : > { %v389_v61 = vadd.f32 %v373_v21, %v319_v56  ;;  %v390_v62 = vadd.f32 %v374_v55, %v320_v57 }
  0xd8   : > { %v409_v60 = vpop.permute.xlu1 %408 }
  0xd9   : > { %v443_v63 = vmul.f32 %v1276_v47, %v409_v60  ;;  %v444_v1 = vmul.f32 %v1278_v48, %v409_v60 }
  0xdb   : > { %v459_v3 = vadd.f32 %v443_v63, %v389_v61  ;;  %v460_v4 = vadd.f32 %v444_v1, %v390_v62 }
  0xdd   : > { %v515_v31 = vadd.f32 %v481_v7, %v459_v3  ;;  %v516_v8 = vadd.f32 %v481_v7, %v460_v4 }
  0xdf   : > { %v547_v39 = vmul.f32 0.2, %v515_v31  ;;  %v548_v12 = vmul.f32 0.2, %v516_v8  ;;  %vm531_vm12 = vcmp.gt.f32.partialorder %v515_v31, 0.0  ;;  %vm532_vm13 = vcmp.gt.f32.partialorder %v516_v8, 0.0 }
  0xe1   : > { %v476_v11 = vpop.permute.xlu1 %475  ;;  %v563_v48 = vsel %vm531_vm12, %v515_v31, %v547_v39  ;;  %v564_v14 = vsel %vm532_vm13, %v516_v8, %v548_v12 }
  0xe2   : > { %v513_v5 = vadd.f32 %v476_v11, %v457_v9  ;;  %v514_v29 = vadd.f32 %v476_v11, %v458_v10 }
  0xe4   : > { %v545_v40 = vmul.f32 0.2, %v513_v5  ;;  %v546_v13 = vmul.f32 0.2, %v514_v29  ;;  %vm529_vm14 = vcmp.gt.f32.partialorder %v513_v5, 0.0  ;;  %vm530_vm15 = vcmp.gt.f32.partialorder %v514_v29, 0.0 }
  0xe6   : > { %v561_v47 = vsel %vm529_vm14, %v513_v5, %v545_v40  ;;  %v562_v0 = vsel %vm530_vm15, %v514_v29, %v546_v13 }
  0xe7   : > { %v577_v15 = vpack.c.bf16 %v563_v48, %v561_v47  ;;  %v578_v16 = vpack.c.bf16 %v564_v14, %v562_v0 }
  0xe9   : > { %657 = vmatpush.bf16.msra.mxu0 %v577_v15  ;;  %1071 = vmatpush.bf16.msra.mxu2 %v577_v15 }
  0xea   : > { %706 = vmatpush.bf16.msra.mxu1 %v578_v16  ;;  %1075 = vmatpush.bf16.msra.mxu3 %v578_v16 }
  0xec   : > { %1040 = vmatmul.msk.bf16.vlgmr.msra.gmra.mxu0 %vm625_vm0, %v1060_v17  ;;  %1044 = vmatmul.msk.bf16.vlgmr.msra.gmra.mxu2 %vm625_vm0, %v1064_v18 }
  0xed   : > { %1048 = vmatmul.msk.bf16.vlgmr.msra.gmra.mxu1 %vm625_vm0, %v1060_v17  ;;  %1052 = vmatmul.msk.bf16.vlgmr.msra.gmra.mxu3 %vm625_vm0, %v1064_v18 }
  0xfc   : > { %1041 = vmatmul.msk.bf16.gmra.mxu0 %vm625_vm0, %v1061_v38  ;;  %1045 = vmatmul.msk.bf16.gmra.mxu2 %vm625_vm0, %v1065_v19 }
  0xfd   : > { %1049 = vmatmul.msk.bf16.gmra.mxu1 %vm625_vm0, %v1061_v38  ;;  %1053 = vmatmul.msk.bf16.gmra.mxu3 %vm625_vm0, %v1065_v19 }
 0x10c   : > { %1042 = vmatmul.msk.bf16.gmra.mxu0 %vm625_vm0, %v1062_v22  ;;  %1046 = vmatmul.msk.bf16.gmra.mxu2 %vm625_vm0, %v1066_v25 }
 0x10d   : > { %1050 = vmatmul.msk.bf16.gmra.mxu1 %vm625_vm0, %v1062_v22  ;;  %1054 = vmatmul.msk.bf16.gmra.mxu3 %vm625_vm0, %v1066_v25 }
 0x11c   : > { %1047 = vmatmul.msk.bf16.gmra.mxu2 %vm625_vm0, %v1067_v46  ;;  %1043 = vmatmul.msk.bf16.gmra.mxu0 %vm625_vm0, %v1063_v27 }
 0x11d   : > { %1055 = vmatmul.msk.bf16.gmra.mxu3 %vm625_vm0, %v1067_v46  ;;  %1051 = vmatmul.msk.bf16.gmra.mxu1 %vm625_vm0, %v1063_v27 }
 0x169   : > { %v659_v30 = vpop.f32.mrf.mxu0 }
 0x16a   : > { %v708_v32 = vpop.f32.mrf.mxu1  ;;  %v796_v34 = vmul.f32 %v659_v30, %v659_v30 }
 0x16b   : > { %v748_v33 = vadd.f32 %v708_v32, %v659_v30  ;;  %v797_v35 = vmul.f32 %v708_v32, %v708_v32 }
 0x16d   : > { %749 = vadd.xlane.f32.xlu1 %v748_v33  ;;  %v828_v45 = vadd.f32 %v797_v35, %v796_v34 }
 0x16f   : > { %v679_v36 = vpop.f32.mrf.mxu2 }
 0x170   : > { %v812_v26 = vmul.f32 %v679_v36, %v679_v36  ;;  %v728_v28 = vpop.f32.mrf.mxu3 }
 0x171   : > { %v813_v37 = vmul.f32 %v728_v28, %v728_v28  ;;  %v661_v43 = vpop.f32.mrf.mxu0  ;;  %v772_v44 = vadd.f32 %v728_v28, %v679_v36 }
 0x172   : > { %v710_v49 = vpop.f32.mrf.mxu1  ;;  %v798_v58 = vmul.f32 %v661_v43, %v661_v43 }
 0x173   : > { %773 = vadd.xlane.f32.xlu2 %v772_v44  ;;  %v852_v24 = vadd.f32 %v813_v37, %v812_v26  ;;  %v751_v54 = vadd.f32 %v710_v49, %v661_v43  ;;  %v799_v59 = vmul.f32 %v710_v49, %v710_v49 }
 0x175   : > { %853 = vadd.xlane.f32.xlu0 %v852_v24  ;;  %829 = vadd.xlane.f32.xlu1 %v828_v45  ;;  %v831_v62 = vadd.f32 %v799_v59, %v798_v58 }
 0x177   : > { %v681_v50 = vpop.f32.mrf.mxu2 }
 0x178   : > { %v814_v51 = vmul.f32 %v681_v50, %v681_v50  ;;  %v730_v52 = vpop.f32.mrf.mxu3 }
 0x179   : > { %v815_v53 = vmul.f32 %v730_v52, %v730_v52  ;;  %v664_v21 = vpop.f32.mrf.mxu0  ;;  %v775_v56 = vadd.f32 %v730_v52, %v681_v50 }
 0x17a   : > { %v713_v55 = vpop.f32.mrf.mxu1  ;;  %v800_v3 = vmul.f32 %v664_v21, %v664_v21 }
 0x17b   : > { %752 = vadd.xlane.f32.xlu2 %v751_v54  ;;  %v855_v57 = vadd.f32 %v815_v53, %v814_v51  ;;  %v754_v1 = vadd.f32 %v713_v55, %v664_v21  ;;  %v801_v4 = vmul.f32 %v713_v55, %v713_v55 }
 0x17d   : > { %776 = vadd.xlane.f32.xlu0 %v775_v56  ;;  %856 = vadd.xlane.f32.xlu1 %v855_v57  ;;  %v834_v6 = vadd.f32 %v801_v4, %v800_v3 }
 0x17f   : > { %v684_v60 = vpop.f32.mrf.mxu2 }
 0x180   : > { %v733_v61 = vpop.f32.mrf.mxu3  ;;  %v816_v9 = vmul.f32 %v684_v60, %v684_v60 }
 0x181   : > { %v778_v63 = vadd.f32 %v733_v61, %v684_v60  ;;  %v666_v23 = vpop.f32.mrf.mxu0  ;;  %v817_v10 = vmul.f32 %v733_v61, %v733_v61 }
 0x182   : > { %v715_v2 = vpop.f32.mrf.mxu1  ;;  %v802_v41 = vmul.f32 %v666_v23, %v666_v23 }
 0x183   : > { %832 = vadd.xlane.f32.xlu2 %v831_v62  ;;  %v803_v42 = vmul.f32 %v715_v2, %v715_v2  ;;  %v757_v20 = vadd.f32 %v715_v2, %v666_v23  ;;  %v858_v29 = vadd.f32 %v817_v10, %v816_v9 }
 0x185   : > { %779 = vadd.xlane.f32.xlu1 %v778_v63  ;;  %755 = vadd.xlane.f32.xlu0 %v754_v1  ;;  %v837_v7 = vadd.f32 %v803_v42, %v802_v41 }
 0x187   : > { %v686_v31 = vpop.f32.mrf.mxu2 }
 0x188   : > { %v735_v8 = vpop.f32.mrf.mxu3  ;;  %v818_v11 = vmul.f32 %v686_v31, %v686_v31 }
 0x189   : > { %v819_v39 = vmul.f32 %v735_v8, %v735_v8  ;;  %v669_v12 = vpop.f32.mrf.mxu0  ;;  %v781_v15 = vadd.f32 %v735_v8, %v686_v31 }
 0x18a   : > { %v718_v5 = vpop.f32.mrf.mxu1  ;;  %v804_v19 = vmul.f32 %v669_v12, %v669_v12 }
 0x18b   : > { %758 = vadd.xlane.f32.xlu2 %v757_v20  ;;  %v760_v40 = vadd.f32 %v718_v5, %v669_v12  ;;  %v861_v13 = vadd.f32 %v819_v39, %v818_v11  ;;  %v805_v22 = vmul.f32 %v718_v5, %v718_v5 }
 0x18d   : > { %835 = vadd.xlane.f32.xlu0 %v834_v6  ;;  %838 = vadd.xlane.f32.xlu1 %v837_v7  ;;  %v840_v32 = vadd.f32 %v805_v22, %v804_v19 }
 0x18f   : > { %v689_v47 = vpop.f32.mrf.mxu2 }
 0x190   : > { %v738_v48 = vpop.f32.mrf.mxu3  ;;  %v820_v0 = vmul.f32 %v689_v47, %v689_v47 }
 0x191   : > { %v821_v14 = vmul.f32 %v738_v48, %v738_v48  ;;  %v784_v16 = vadd.f32 %v738_v48, %v689_v47  ;;  %v671_v18 = vpop.f32.mrf.mxu0 }
 0x192   : > { %v720_v38 = vpop.f32.mrf.mxu1  ;;  %v806_v27 = vmul.f32 %v671_v18, %v671_v18 }
 0x193   : > { %859 = vadd.xlane.f32.xlu2 %v858_v29  ;;  %v864_v17 = vadd.f32 %v821_v14, %v820_v0  ;;  %v807_v30 = vmul.f32 %v720_v38, %v720_v38  ;;  %v763_v44 = vadd.f32 %v720_v38, %v671_v18 }
 0x195   : > { %862 = vadd.xlane.f32.xlu0 %v861_v13  ;;  %761 = vadd.xlane.f32.xlu1 %v760_v40  ;;  %v843_v34 = vadd.f32 %v807_v30, %v806_v27 }
 0x197   : > { %v691_v25 = vpop.f32.mrf.mxu2 }
 0x198   : > { %v740_v46 = vpop.f32.mrf.mxu3  ;;  %v822_v1 = vmul.f32 %v691_v25, %v691_v25 }
 0x199   : > { %v787_v33 = vadd.f32 %v740_v46, %v691_v25  ;;  %v674_v35 = vpop.f32.mrf.mxu0  ;;  %v823_v23 = vmul.f32 %v740_v46, %v740_v46 }
 0x19a   : > { %v723_v36 = vpop.f32.mrf.mxu1  ;;  %v808_v26 = vmul.f32 %v674_v35, %v674_v35 }
 0x19b   : > { %782 = vadd.xlane.f32.xlu2 %v781_v15  ;;  %v809_v28 = vmul.f32 %v723_v36, %v723_v36  ;;  %v766_v49 = vadd.f32 %v723_v36, %v674_v35  ;;  %v867_v2 = vadd.f32 %v823_v23, %v822_v1 }
 0x19d   : > { %785 = vadd.xlane.f32.xlu0 %v784_v16  ;;  %865 = vadd.xlane.f32.xlu1 %v864_v17  ;;  %v846_v45 = vadd.f32 %v809_v28, %v808_v26 }
 0x19f   : > { %v694_v37 = vpop.f32.mrf.mxu2 }
 0x1a0   : > { %v743_v43 = vpop.f32.mrf.mxu3  ;;  %v824_v57 = vmul.f32 %v694_v37, %v694_v37 }
 0x1a1   : > { %v676_v24 = vpop.f32.mrf.mxu0  ;;  %v790_v51 = vadd.f32 %v743_v43, %v694_v37  ;;  %v825_v58 = vmul.f32 %v743_v43, %v743_v43 }
 0x1a2   : > { %v725_v50 = vpop.f32.mrf.mxu1  ;;  %v810_v55 = vmul.f32 %v676_v24, %v676_v24 }
 0x1a3   : > { %841 = vadd.xlane.f32.xlu2 %v840_v32  ;;  %v769_v54 = vadd.f32 %v725_v50, %v676_v24  ;;  %v811_v56 = vmul.f32 %v725_v50, %v725_v50  ;;  %v870_v62 = vadd.f32 %v825_v58, %v824_v57 }
 0x1a5   : > { %788 = vadd.xlane.f32.xlu1 %v787_v33  ;;  %844 = vadd.xlane.f32.xlu0 %v843_v34  ;;  %v849_v61 = vadd.f32 %v811_v56, %v810_v55 }
 0x1a7   : > { %v696_v52 = vpop.f32.mrf.mxu2 }
 0x1a8   : > { %v745_v53 = vpop.f32.mrf.mxu3  ;;  %v826_v59 = vmul.f32 %v696_v52, %v696_v52 }
 0x1a9   : > { %v793_v21 = vadd.f32 %v745_v53, %v696_v52  ;;  %v827_v60 = vmul.f32 %v745_v53, %v745_v53 }
 0x1ab   : > { %764 = vadd.xlane.f32.xlu2 %v763_v44  ;;  %v873_v63 = vadd.f32 %v827_v60, %v826_v59 }
 0x1ad   : > { %847 = vadd.xlane.f32.xlu1 %v846_v45  ;;  %767 = vadd.xlane.f32.xlu0 %v766_v49 }
 0x1b3   : > { %791 = vadd.xlane.f32.xlu2 %v790_v51 }
 0x1b5   : > { %794 = vadd.xlane.f32.xlu0 %v793_v21  ;;  %770 = vadd.xlane.f32.xlu1 %v769_v54 }
 0x1bb   : > { %850 = vadd.xlane.f32.xlu2 %v849_v61 }
 0x1bd   : > { %871 = vadd.xlane.f32.xlu0 %v870_v62  ;;  %874 = vadd.xlane.f32.xlu1 %v873_v63 }
 0x1c3   : > { %868 = vadd.xlane.f32.xlu2 %v867_v2 }
 0x1e0   : > { %v750_v3 = vpop.xlane.xlu1 %749 }
 0x1e6   : > { %v774_v4 = vpop.xlane.xlu2 %773 }
 0x1e8   : > { %v854_v41 = vpop.xlane.xlu0 %853  ;;  %v830_v42 = vpop.xlane.xlu1 %829 }
 0x1e9   : > { %v885_v20 = vsel %vm876_vm1, %v774_v4, %v854_v41  ;;  %v877_v6 = vsel %vm876_vm1, %v750_v3, %v830_v42 }
 0x1ea   : > { %902 = vst.msk [vmem:[%s1392_s30 + $0x40] sm:$0xff] %vm893_vm2, %v885_v20 }
 0x1eb   : > { %894 = vst.msk [vmem:[%s1392_s30] sm:$0xff] %vm893_vm2, %v877_v6 }
 0x1ee   : > { %v753_v7 = vpop.xlane.xlu2 %752 }
 0x1f0   : > { %v777_v31 = vpop.xlane.xlu0 %776  ;;  %v857_v8 = vpop.xlane.xlu1 %856 }
 0x1f1   : > { %v886_v9 = vsel %vm876_vm1, %v777_v31, %v857_v8 }
 0x1f2   : > { %903 = vst.msk [vmem:[%s1392_s30 + $0x48] sm:$0xff] %vm893_vm2, %v886_v9 }
 0x1f6   : > { %v833_v10 = vpop.xlane.xlu2 %832 }
 0x1f7   : > { %v878_v11 = vsel %vm876_vm1, %v753_v7, %v833_v10 }
 0x1f8   : > { %895 = vst.msk [vmem:[%s1392_s30 + $0x8] sm:$0xff] %vm893_vm2, %v878_v11  ;;  %v780_v39 = vpop.xlane.xlu1 %779  ;;  %v756_v12 = vpop.xlane.xlu0 %755 }
 0x1fe   : > { %v759_v5 = vpop.xlane.xlu2 %758 }
 0x200   : > { %v836_v29 = vpop.xlane.xlu0 %835  ;;  %v839_v40 = vpop.xlane.xlu1 %838 }
 0x201   : > { %v879_v13 = vsel %vm876_vm1, %v756_v12, %v836_v29  ;;  %v880_v47 = vsel %vm876_vm1, %v759_v5, %v839_v40 }
 0x202   : > { %896 = vst.msk [vmem:[%s1392_s30 + $0x10] sm:$0xff] %vm893_vm2, %v879_v13 }
 0x203   : > { %897 = vst.msk [vmem:[%s1392_s30 + $0x18] sm:$0xff] %vm893_vm2, %v880_v47 }
 0x206   : > { %v860_v48 = vpop.xlane.xlu2 %859 }
 0x207   : > { %v887_v0 = vsel %vm876_vm1, %v780_v39, %v860_v48 }
 0x208   : > { %904 = vst.msk [vmem:[%s1392_s30 + $0x50] sm:$0xff] %vm893_vm2, %v887_v0  ;;  %v863_v14 = vpop.xlane.xlu0 %862  ;;  %v762_v15 = vpop.xlane.xlu1 %761 }
 0x20e   : > { %v783_v16 = vpop.xlane.xlu2 %782 }
 0x20f   : > { %v888_v17 = vsel %vm876_vm1, %v783_v16, %v863_v14 }
 0x210   : > { %905 = vst.msk [vmem:[%s1392_s30 + $0x58] sm:$0xff] %vm893_vm2, %v888_v17  ;;  %v786_v18 = vpop.xlane.xlu0 %785  ;;  %v866_v38 = vpop.xlane.xlu1 %865 }
 0x211   : > { %v889_v19 = vsel %vm876_vm1, %v786_v18, %v866_v38 }
 0x212   : > { %906 = vst.msk [vmem:[%s1392_s30 + $0x60] sm:$0xff] %vm893_vm2, %v889_v19 }
 0x216   : > { %v842_v22 = vpop.xlane.xlu2 %841 }
 0x217   : > { %v881_v25 = vsel %vm876_vm1, %v762_v15, %v842_v22 }
 0x218   : > { %898 = vst.msk [vmem:[%s1392_s30 + $0x20] sm:$0xff] %vm893_vm2, %v881_v25  ;;  %v789_v46 = vpop.xlane.xlu1 %788  ;;  %v845_v27 = vpop.xlane.xlu0 %844 }
 0x21e   : > { %v765_v30 = vpop.xlane.xlu2 %764 }
 0x21f   : > { %v882_v32 = vsel %vm876_vm1, %v765_v30, %v845_v27 }
 0x220   : > { %899 = vst.msk [vmem:[%s1392_s30 + $0x28] sm:$0xff] %vm893_vm2, %v882_v32  ;;  %v848_v33 = vpop.xlane.xlu1 %847  ;;  %v768_v34 = vpop.xlane.xlu0 %767 }
 0x221   : > { %v883_v35 = vsel %vm876_vm1, %v768_v34, %v848_v33 }
 0x222   : > { %900 = vst.msk [vmem:[%s1392_s30 + $0x30] sm:$0xff] %vm893_vm2, %v883_v35 }
 0x226   : > { %v792_v36 = vpop.xlane.xlu2 %791 }
 0x228   : > { %v795_v26 = vpop.xlane.xlu0 %794  ;;  %v771_v28 = vpop.xlane.xlu1 %770 }
 0x22e   : > { %v851_v37 = vpop.xlane.xlu2 %850 }
 0x22f   : > { %v884_v43 = vsel %vm876_vm1, %v771_v28, %v851_v37 }
 0x230   : > { %901 = vst.msk [vmem:[%s1392_s30 + $0x38] sm:$0xff] %vm893_vm2, %v884_v43  ;;  %v872_v44 = vpop.xlane.xlu0 %871  ;;  %v875_v45 = vpop.xlane.xlu1 %874 }
 0x231   : > { %v891_v49 = vsel %vm876_vm1, %v792_v36, %v872_v44  ;;  %v892_v24 = vsel %vm876_vm1, %v795_v26, %v875_v45 }
 0x232   : > { %908 = vst.msk [vmem:[%s1392_s30 + $0x70] sm:$0xff] %vm893_vm2, %v891_v49 }
 0x233   : > { %909 = vst.msk [vmem:[%s1392_s30 + $0x78] sm:$0xff] %vm893_vm2, %v892_v24 }
 0x236   : > { %v869_v50 = vpop.xlane.xlu2 %868 }
 0x237   : > { %v890_v51 = vsel %vm876_vm1, %v789_v46, %v869_v50 }
 0x238   : > { %907 = vst.msk [vmem:[%s1392_s30 + $0x68] sm:$0xff] %vm893_vm2, %v890_v51 }
 0x239 PF: > { %s14_s17 = sadd.s32 1, %s1146_s17   ;;  %s1456_s15 = smov %s1142_s16 }
 0x23a   : > { %p11_p5 = scmp.ge.s32.totalorder %s14_s17, 4   ;;  %s1457_s16 = smov %s1459_s18 }
 0x23c   :  { %13 = sbr.rel (!%p11_p5) target bundleno = 2 (0x2), region = 66 }

// kernel: pixel_discriminator_forward.3
= control target key start
LH: loop header
LB: loop body
LE: loop exit
PB: predicated region body
PF: predicated region fallthrough
CT: control target
= control target key end

     0   :  { %s1622_s24 = smov 0   ;;  %s1624_s25 = smov 0   ;;  %s2219_s0 = inlined_call_operand.vmem [shape: f32[2,3,256], index: 0, kind: input, shape index: {}]   ;;  %s2220_s1 = inlined_call_operand.vmem [shape: f32[64,3], index: 1, kind: input, shape index: {}]   ;;  %s2221_s2 = inlined_call_operand.vmem [shape: f32[64,1], index: 2, kind: input, shape index: {}]   ;;  %s2222_s3 = inlined_call_operand.vmem [shape: bf16[128,64], index: 3, kind: input, shape index: {}]   ;;  %s2223_s4 = inlined_call_operand.vmem [shape: f32[128,1], index: 4, kind: input, shape index: {}]   ;;  %s2224_s5 = inlined_call_operand.vmem [shape: f32[128,1], index: 5, kind: input, shape index: {}]   ;;  %s2225_s6 = inlined_call_operand.vmem [shape: f32[128,1], index: 6, kind: input, shape index: {}]   ;;  %s2226_s7 = inlined_call_operand.vmem [shape: f32[2,1,256], index: 7, kind: output, shape index: {}]  }
   0x1   :  { %s1626_s26 = smov 0  }
   0x2 LB: > { %s29_s27 = sadd.s32 1, %s1573_s25  ;;  %p1446_p0 = scmp.ge.s32.totalorder %s1577_s26, 1  ;;  %s1577_s26 = sphi %s1626_s26, %s17_s26   ;;  %s1573_s25 = sphi %s1624_s25, %s2234_s25   ;;  %s1569_s24 = sphi %s1622_s24, %s2233_s24  }
   0x3   : > { %p31_p1 = scmp.ge.s32.totalorder %s29_s27, 2  ;;  %p258_p2 = scmp.lt.s32.totalorder %s1577_s26, 3 }
   0x5   : > { %s2236_s27 = smov (%p31_p1, %s29_s27), 0  ;;  %p259_p3 = pnand %p1446_p0, %p258_p2 }
   0x7   : > { %262 = sbr.rel (%p259_p3) target bundleno = 469 (0x1d5), region = 48 }
   0xc   : > { %v322_v0 = vld [vmem:[%s2220_s1 + $0x20] sm:$0xff]  ;;  %v320_v1 = vld [vmem:[%s2220_s1 + $0x10] sm:$0xff]  ;;  %v319_v2 = vld [vmem:[%s2220_s1 + $0x8] sm:$0xff]  ;;  %v1579_v3 = vmov 1   ;;  %v1580_v4 = vmov 0   ;;  %v1581_v10 = vmov 2  }
   0xd   : > { %1547 = vset.pattern.permute.xlu0 %v1579_v3  ;;  %1545 = vset.pattern.permute.xlu2 %v1580_v4  ;;  %v323_v5 = vld [vmem:[%s2220_s1 + $0x28] sm:$0xff]  ;;  %v321_v6 = vld [vmem:[%s2220_s1 + $0x18] sm:$0xff]  ;;  %v324_v7 = vld [vmem:[%s2220_s1 + $0x30] sm:$0xff]  ;;  %p298_p4 = scmp.lt.s32.totalorder %s1569_s24, 1 }
   0xe   : > { %1544 = vset.pattern.permute.xlu1 %v1580_v4  ;;  %372 = vperm.xlu2 %1545, %v322_v0   ;;  %v325_v8 = vld [vmem:[%s2220_s1 + $0x38] sm:$0xff]  ;;  %v318_v9 = vld [vmem:[%s2220_s1] sm:$0xff]  ;;  %v327_v11 = vld [vmem:[%s2221_s2 + $0x8] sm:$0xff] }
   0xf   : > { %362 = vperm.xlu1 %1544, %v320_v1   ;;  %418 = vperm.xlu0 %1547, %v319_v2   ;;  %v332_v12 = vld [vmem:[%s2221_s2 + $0x30] sm:$0xff]  ;;  %v326_v13 = vld [vmem:[%s2221_s2] sm:$0xff]  ;;  %v829_v14 = vld [vmem:[%s2223_s4 + $0x8] sm:$0xff]  ;;  %s2238_s24 = smov (!%p298_p4, %s1569_s24), 1 }
  0x10   : > { %v328_v15 = vld [vmem:[%s2221_s2 + $0x10] sm:$0xff]  ;;  %v329_v16 = vld [vmem:[%s2221_s2 + $0x18] sm:$0xff]  ;;  %v832_v17 = vld [vmem:[%s2223_s4 + $0x20] sm:$0xff]  ;;  %s1500_s12 = sshll.u32 %s2238_s24, 3  ;;  %s1449_s20 = sshll.u32 %s2238_s24, 1 }
  0x11   : > { %v330_v18 = vld [vmem:[%s2221_s2 + $0x20] sm:$0xff]  ;;  %v331_v19 = vld [vmem:[%s2221_s2 + $0x28] sm:$0xff]  ;;  %v835_v20 = vld [vmem:[%s2223_s4 + $0x38] sm:$0xff]  ;;  %s305_s15 = scalar_lea.vmem %s2219_s0, %s1500_s12  ;;  %s314_s23 = scalar_lea.vmem %s2226_s7, %s1449_s20 }
  0x12   : > { %v333_v21 = vld [vmem:[%s2221_s2 + $0x38] sm:$0xff]  ;;  %v828_v22 = vld [vmem:[%s2223_s4] sm:$0xff]  ;;  %v838_v24 = vld [vmem:[%s2223_s4 + $0x50] sm:$0xff] }
  0x13   : > { %v830_v25 = vld [vmem:[%s2223_s4 + $0x10] sm:$0xff]  ;;  %v831_v26 = vld [vmem:[%s2223_s4 + $0x18] sm:$0xff]  ;;  %v841_v28 = vld [vmem:[%s2223_s4 + $0x68] sm:$0xff] }
  0x14   : > { %v833_v29 = vld [vmem:[%s2223_s4 + $0x28] sm:$0xff]  ;;  %v834_v30 = vld [vmem:[%s2223_s4 + $0x30] sm:$0xff]  ;;  %v956_v32 = vld [vmem:[%s2224_s5] sm:$0xff] }
  0x15   : > { %v836_v33 = vld [vmem:[%s2223_s4 + $0x40] sm:$0xff]  ;;  %v837_v34 = vld [vmem:[%s2223_s4 + $0x48] sm:$0xff]  ;;  %v959_v38 = vld [vmem:[%s2224_s5 + $0x18] sm:$0xff] }
  0x16   : > { %377 = vperm.xlu2 %1545, %v323_v5   ;;  %v839_v39 = vld [vmem:[%s2223_s4 + $0x58] sm:$0xff]  ;;  %v840_v40 = vld [vmem:[%s2223_s4 + $0x60] sm:$0xff]  ;;  %v962_v44 = vld [vmem:[%s2224_s5 + $0x30] sm:$0xff] }
  0x17   : > { %367 = vperm.xlu1 %1544, %v321_v6   ;;  %438 = vperm.xlu0 %1547, %v324_v7   ;;  %v842_v45 = vld [vmem:[%s2223_s4 + $0x70] sm:$0xff]  ;;  %v317_v46 = vld [vmem:[%s305_s15] sm:$0x77]  ;;  %v843_v47 = vld [vmem:[%s2223_s4 + $0x78] sm:$0xff] }
  0x18   : > { %v391_v50 = vperm.slane %v317_v46, 0  ;;  %v392_v51 = vperm.slane %v317_v46, 4  ;;  %v445_v52 = vperm.slane %v317_v46, 1  ;;  %v446_v53 = vperm.slane %v317_v46, 5  ;;  %v965_v54 = vld [vmem:[%s2224_s5 + $0x48] sm:$0xff]  ;;  %v958_v59 = vld [vmem:[%s2224_s5 + $0x10] sm:$0xff] }
  0x19   : > { %v957_v57 = vld [vmem:[%s2224_s5 + $0x8] sm:$0xff] }
  0x1a   : > { %v1778_v55 = vperm.slane %v391_v50, 0  ;;  %v1780_v56 = vperm.slane %v392_v51, 0  ;;  %v1788_v60 = vperm.slane %v445_v52, 1  ;;  %v1790_v61 = vperm.slane %v446_v53, 1  ;;  %v1185_v51 = vld [vmem:[%s2225_s6 + $0x28] sm:$0xff] }
  0x1e   : > { %1546 = vset.pattern.permute.xlu2 %v1579_v3 }
  0x1f   : > { %387 = vperm.xlu1 %1544, %v325_v8   ;;  %1550 = vset.pattern.permute.xlu0 %v1581_v10 }
  0x20   : > { %488 = vperm.xlu0 %1550, %v319_v2   ;;  %414 = vperm.xlu2 %1546, %v318_v9  }
  0x27   : > { %1548 = vset.pattern.permute.xlu1 %v1579_v3 }
  0x28   : > { %422 = vperm.xlu1 %1548, %v320_v1   ;;  %508 = vperm.xlu0 %1550, %v324_v7  }
  0x29   : > { %426 = vperm.xlu2 %1546, %v321_v6  }
  0x30   : > { %430 = vperm.xlu1 %1548, %v322_v0   ;;  %1552 = vset.pattern.permute.xlu0 %v1580_v4 }
  0x31   : > { %434 = vperm.xlu2 %1546, %v323_v5   ;;  %352 = vperm.xlu0 %1552, %v318_v9  }
  0x38   : > { %442 = vperm.xlu1 %1548, %v325_v8  }
  0x39   : > { %1549 = vset.pattern.permute.xlu2 %v1581_v10  ;;  %357 = vperm.xlu0 %1552, %v319_v2  }
  0x3a   : > { %484 = vperm.xlu2 %1549, %v318_v9  }
  0x40   : > { %1551 = vset.pattern.permute.xlu1 %v1581_v10 }
  0x41   : > { %492 = vperm.xlu1 %1551, %v320_v1   ;;  %382 = vperm.xlu0 %1552, %v324_v7   ;;  %v960_v7 = vld [vmem:[%s2224_s5 + $0x20] sm:$0xff] }
  0x42   : > { %496 = vperm.xlu2 %1549, %v321_v6   ;;  %v968_v6 = vld [vmem:[%s2224_s5 + $0x60] sm:$0xff] }
  0x49   : > { %500 = vperm.xlu1 %1551, %v322_v0   ;;  %560 = vperm.xlu0 %1552, %v327_v11  }
  0x4a   : > { %504 = vperm.xlu2 %1549, %v323_v5  }
  0x51   : > { %512 = vperm.xlu1 %1551, %v325_v8   ;;  %585 = vperm.xlu0 %1552, %v332_v12   ;;  %v961_v8 = vld [vmem:[%s2224_s5 + $0x28] sm:$0xff]  ;;  %v971_v12 = vld [vmem:[%s2224_s5 + $0x78] sm:$0xff] }
  0x52   : > { %1553 = vset.pattern.permute.xlu2 %v1580_v4 }
  0x53   : > { %555 = vperm.xlu2 %1553, %v326_v13   ;;  %v963_v13 = vld [vmem:[%s2224_s5 + $0x38] sm:$0xff] }
  0x59   : > { %1554 = vset.pattern.permute.xlu1 %v1580_v4  ;;  %851 = vperm.xlu0 %1552, %v829_v14   ;;  %v964_v14 = vld [vmem:[%s2224_s5 + $0x40] sm:$0xff] }
  0x5a   : > { %565 = vperm.xlu1 %1554, %v328_v15  }
  0x5b   : > { %570 = vperm.xlu2 %1553, %v329_v16  }
  0x61   : > { %866 = vperm.xlu0 %1552, %v832_v17  }
  0x62   : > { %575 = vperm.xlu1 %1554, %v330_v18   ;;  %v515_v18 = vperm.slane %v317_v46, 2 }
  0x63   : > { %580 = vperm.xlu2 %1553, %v331_v19   ;;  %v516_v19 = vperm.slane %v317_v46, 6 }
  0x68   : > { %v1702_v23 = vpop.permute.xlu2 %372 }
  0x69   : > { %881 = vperm.xlu0 %1552, %v835_v20   ;;  %v1182_v20 = vld [vmem:[%s2225_s6 + $0x10] sm:$0xff] }
  0x6a   : > { %590 = vperm.xlu1 %1554, %v333_v21  }
  0x6b   : > { %846 = vperm.xlu2 %1553, %v828_v22  }
  0x70   : > { %v1713_v27 = vpop.permute.xlu2 %377 }
  0x71   : > { %896 = vperm.xlu0 %1552, %v838_v24   ;;  %v966_v24 = vld [vmem:[%s2224_s5 + $0x50] sm:$0xff] }
  0x72   : > { %856 = vperm.xlu1 %1554, %v830_v25   ;;  %v967_v25 = vld [vmem:[%s2224_s5 + $0x58] sm:$0xff] }
  0x73   : > { %861 = vperm.xlu2 %1553, %v831_v26  }
  0x79   : > { %911 = vperm.xlu0 %1552, %v841_v28  }
  0x7a   : > { %871 = vperm.xlu1 %1554, %v833_v29   ;;  %v1724_v31 = vpop.permute.xlu2 %414  ;;  %v1843_v29 = vperm.slane %v515_v18, 2 }
  0x7b   : > { %876 = vperm.xlu2 %1553, %v834_v30   ;;  %v451_v26 = vmul.f32 %v1788_v60, %v1724_v31  ;;  %v452_v28 = vmul.f32 %v1790_v61, %v1724_v31  ;;  %v1845_v30 = vperm.slane %v516_v19, 2 }
  0x81   : > { %v363_v35 = vpop.permute.xlu1 %362  ;;  %974 = vperm.xlu0 %1552, %v956_v32   ;;  %v1735_v36 = vpop.permute.xlu0 %418 }
  0x82   : > { %886 = vperm.xlu1 %1554, %v836_v33   ;;  %v401_v0 = vmul.f32 %v1778_v55, %v363_v35  ;;  %v402_v1 = vmul.f32 %v1780_v56, %v363_v35  ;;  %v453_v31 = vmul.f32 %v1788_v60, %v1735_v36 }
  0x83   : > { %891 = vperm.xlu2 %1553, %v837_v34   ;;  %v1738_v37 = vpop.permute.xlu2 %426 }
  0x84   : > { %v458_v18 = vmul.f32 %v1790_v61, %v1738_v37 }
  0x89   : > { %v1752_v41 = vpop.permute.xlu1 %367  ;;  %989 = vperm.xlu0 %1552, %v959_v38   ;;  %v1754_v42 = vpop.permute.xlu0 %438 }
  0x8a   : > { %901 = vperm.xlu1 %1554, %v839_v39   ;;  %v403_v19 = vmul.f32 %v1778_v55, %v1752_v41 }
  0x8b   : > { %906 = vperm.xlu2 %1553, %v840_v40   ;;  %v1760_v43 = vpop.permute.xlu2 %434 }
  0x91   : > { %v1771_v48 = vpop.permute.xlu1 %387  ;;  %1004 = vperm.xlu0 %1552, %v962_v44  }
  0x92   : > { %916 = vperm.xlu1 %1554, %v842_v45   ;;  %v1773_v49 = vpop.permute.xlu0 %488  ;;  %v454_v45 = vmul.f32 %v1790_v61, %v1735_v36  ;;  %v970_v36 = vld [vmem:[%s2224_s5 + $0x70] sm:$0xff] }
  0x93   : > { %921 = vperm.xlu2 %1553, %v843_v47  }
  0x94   : > { %v485_v58 = vpop.permute.xlu2 %484 }
  0x95   : > { %v521_v34 = vmul.f32 %v1843_v29, %v485_v58  ;;  %v522_v35 = vmul.f32 %v1845_v30, %v485_v58  ;;  %v524_v58 = vmul.f32 %v1845_v30, %v1773_v49 }
  0x99   : > { %1019 = vperm.xlu0 %1552, %v965_v54   ;;  %v969_v54 = vld [vmem:[%s2224_s5 + $0x68] sm:$0xff] }
  0x9a   : > { %979 = vperm.xlu1 %1554, %v957_v57   ;;  %v423_v62 = vpop.permute.xlu1 %422  ;;  %v1792_v63 = vpop.permute.xlu0 %508  ;;  %v523_v57 = vmul.f32 %v1843_v29, %v1773_v49  ;;  %v1188_v49 = vld [vmem:[%s2225_s6 + $0x40] sm:$0xff] }
  0x9b   : > { %v455_v2 = vmul.f32 %v1788_v60, %v423_v62  ;;  %v456_v3 = vmul.f32 %v1790_v61, %v423_v62  ;;  %984 = vperm.xlu2 %1553, %v958_v59  }
  0x9c   : > { %v1811_v9 = vpop.permute.xlu2 %496 }
  0x9d   : > { %v1798_v4 = vadd.f32 %v455_v2, %v401_v0  ;;  %v1800_v5 = vadd.f32 %v456_v3, %v402_v1 }
  0xa1   : > { %1034 = vperm.xlu0 %1552, %v968_v6  }
  0xa2   : > { %994 = vperm.xlu1 %1554, %v960_v7   ;;  %v1813_v10 = vpop.permute.xlu1 %430 }
  0xa3   : > { %999 = vperm.xlu2 %1553, %v961_v8   ;;  %v353_v11 = vpop.permute.xlu0 %352 }
  0xa4   : > { %v1826_v17 = vpop.permute.xlu2 %504  ;;  %v397_v21 = vmul.f32 %v1778_v55, %v353_v11  ;;  %v398_v22 = vmul.f32 %v1780_v56, %v353_v11 }
  0xa6   : > { %v467_v38 = vadd.f32 %v451_v26, %v397_v21  ;;  %v468_v39 = vadd.f32 %v452_v28, %v398_v22  ;;  %v1181_v21 = vld [vmem:[%s2225_s6 + $0x8] sm:$0xff] }
  0xa8   : > { %v537_v52 = vadd.f32 %v521_v34, %v467_v38  ;;  %v538_v53 = vadd.f32 %v522_v35, %v468_v39  ;;  %v407_v39 = vmul.f32 %v1778_v55, %v1713_v27 }
  0xa9   : > { %1049 = vperm.xlu0 %1552, %v971_v12  }
  0xaa   : > { %1009 = vperm.xlu1 %1554, %v963_v13   ;;  %v1824_v15 = vpop.permute.xlu1 %442 }
  0xab   : > { %1014 = vperm.xlu2 %1553, %v964_v14   ;;  %v358_v16 = vpop.permute.xlu0 %357  ;;  %v1180_v14 = vld [vmem:[%s2225_s6] sm:$0xff] }
  0xac   : > { %v399_v32 = vmul.f32 %v1778_v55, %v358_v16  ;;  %v400_v33 = vmul.f32 %v1780_v56, %v358_v16  ;;  %v457_v16 = vmul.f32 %v1788_v60, %v1738_v37  ;;  %v527_v37 = vmul.f32 %v1843_v29, %v1811_v9 }
  0xad   : > { %v556_v50 = vpop.permute.xlu2 %555 }
  0xae   : > { %v469_v46 = vadd.f32 %v453_v31, %v399_v32  ;;  %v470_v47 = vadd.f32 %v454_v45, %v400_v33  ;;  %v593_v59 = vadd.f32 %v556_v50, %v537_v52  ;;  %v594_v62 = vadd.f32 %v556_v50, %v538_v53 }
  0xaf   : > { %v473_v35 = vadd.f32 %v457_v16, %v403_v19  ;;  %v408_v31 = vmul.f32 %v1780_v56, %v1713_v27  ;;  %v461_v45 = vmul.f32 %v1788_v60, %v1760_v43  ;;  %v1183_v27 = vld [vmem:[%s2225_s6 + $0x18] sm:$0xff]  ;;  %v405_v53 = vmul.f32 %v1778_v55, %v1702_v23 }
  0xb0   : > { %v539_v0 = vadd.f32 %v523_v57, %v469_v46  ;;  %v540_v1 = vadd.f32 %v524_v58, %v470_v47  ;;  %v625_v8 = vmul.f32 0.2, %v593_v59  ;;  %v626_v11 = vmul.f32 0.2, %v594_v62 }
  0xb1   : > { %1208 = vperm.xlu0 %1552, %v1182_v20   ;;  %vm609_vm0 = vcmp.gt.f32.partialorder %v593_v59, 0.0  ;;  %vm610_vm1 = vcmp.gt.f32.partialorder %v594_v62, 0.0  ;;  %v404_v20 = vmul.f32 %v1780_v56, %v1752_v41  ;;  %v528_v41 = vmul.f32 %v1845_v30, %v1811_v9  ;;  %v1191_v9 = vld [vmem:[%s2225_s6 + $0x58] sm:$0xff] }
  0xb2   : > { %1024 = vperm.xlu1 %1554, %v966_v24   ;;  %v641_v22 = vsel %vm609_vm0, %v593_v59, %v625_v8  ;;  %v462_v46 = vmul.f32 %v1790_v61, %v1760_v43  ;;  %v406_v43 = vmul.f32 %v1780_v56, %v1702_v23  ;;  %v532_v57 = vmul.f32 %v1845_v30, %v1826_v17 }
  0xb3   : > { %1029 = vperm.xlu2 %1553, %v967_v25   ;;  %v493_v40 = vpop.permute.xlu1 %492  ;;  %v1851_v44 = vpop.permute.xlu0 %382  ;;  %v642_v25 = vsel %vm610_vm1, %v594_v62, %v626_v11  ;;  %v474_v38 = vadd.f32 %v458_v18, %v404_v20  ;;  %v463_v58 = vmul.f32 %v1788_v60, %v1754_v42  ;;  %v477_v23 = vadd.f32 %v461_v45, %v407_v39 }
  0xb4   : > { %v525_v47 = vmul.f32 %v1843_v29, %v493_v40  ;;  %v526_v50 = vmul.f32 %v1845_v30, %v493_v40  ;;  %v1184_v40 = vld [vmem:[%s2225_s6 + $0x20] sm:$0xff]  ;;  %v409_v8 = vmul.f32 %v1778_v55, %v1851_v44  ;;  %v410_v11 = vmul.f32 %v1780_v56, %v1851_v44 }
  0xb5   : > { %v571_v33 = vpop.permute.xlu2 %570  ;;  %v544_v52 = vadd.f32 %v528_v41, %v474_v38  ;;  %v534_v45 = vmul.f32 %v1845_v30, %v1792_v63  ;;  %vm705_vm0 = vcmask 523264  }
  0xb7   : > { %v600_v62 = vadd.f32 %v571_v33, %v544_v52 }
  0xb9   : > { %1223 = vperm.xlu0 %1552, %v1185_v51   ;;  %v543_v51 = vadd.f32 %v527_v37, %v473_v35  ;;  %vm616_vm5 = vcmp.gt.f32.partialorder %v600_v62, 0.0 }
  0xba   : > { %1039 = vperm.xlu1 %1554, %v969_v54   ;;  %v531_v54 = vmul.f32 %v1843_v29, %v1826_v17  ;;  %v1936_v17 = vmul.f32 %v1780_v56, %v1771_v48  ;;  %v1186_v56 = vld [vmem:[%s2225_s6 + $0x30] sm:$0xff] }
  0xbb   : > { %1044 = vperm.xlu2 %1553, %v970_v36   ;;  %v1870_v2 = vpop.permute.xlu1 %500  ;;  %v561_v3 = vpop.permute.xlu0 %560  ;;  %v464_v36 = vmul.f32 %v1790_v61, %v1754_v42  ;;  %v599_v59 = vadd.f32 %v571_v33, %v543_v51  ;;  %v460_v42 = vmul.f32 %v1790_v61, %v1813_v10  ;;  %v479_v33 = vadd.f32 %v463_v58, %v409_v8 }
  0xbc   : > { %v595_v6 = vadd.f32 %v561_v3, %v539_v0  ;;  %v596_v7 = vadd.f32 %v561_v3, %v540_v1  ;;  %v478_v0 = vadd.f32 %v462_v46, %v408_v31  ;;  %v1932_v1 = vmul.f32 %v1778_v55, %v1771_v48  ;;  %v1194_v55 = vld [vmem:[%s2225_s6 + $0x70] sm:$0xff] }
  0xbd   : > { %v459_v3 = vmul.f32 %v1788_v60, %v1813_v10  ;;  %v547_v48 = vadd.f32 %v531_v54, %v477_v23  ;;  %v581_v16 = vpop.permute.xlu2 %580  ;;  %v529_v10 = vmul.f32 %v1843_v29, %v1870_v2  ;;  %vm615_vm4 = vcmp.gt.f32.partialorder %v599_v59, 0.0 }
  0xbe   : > { %v627_v12 = vmul.f32 0.2, %v595_v6  ;;  %v628_v13 = vmul.f32 0.2, %v596_v7  ;;  %vm611_vm2 = vcmp.gt.f32.partialorder %v595_v6, 0.0  ;;  %vm612_vm3 = vcmp.gt.f32.partialorder %v596_v7, 0.0 }
  0xbf   : > { %v475_v20 = vadd.f32 %v459_v3, %v405_v53  ;;  %v480_v35 = vadd.f32 %v464_v36, %v410_v11  ;;  %v533_v31 = vmul.f32 %v1843_v29, %v1792_v63 }
  0xc0   : > { %v643_v24 = vsel %vm611_vm2, %v595_v6, %v627_v12  ;;  %v644_v26 = vsel %vm612_vm3, %v596_v7, %v628_v13  ;;  %v541_v6 = vadd.f32 %v525_v47, %v1798_v4  ;;  %v542_v7 = vadd.f32 %v526_v50, %v1800_v5 }
  0xc1   : > { %1238 = vperm.xlu0 %1552, %v1188_v49   ;;  %v1889_v28 = vpack.c.bf16 %v643_v24, %v641_v22  ;;  %v1891_v32 = vpack.c.bf16 %v644_v26, %v642_v25  ;;  %v548_v49 = vadd.f32 %v532_v57, %v478_v0  ;;  %v631_v13 = vmul.f32 0.2, %v599_v59 }
  0xc2   : > { %1198 = vperm.xlu1 %1554, %v1180_v14   ;;  %v632_v14 = vmul.f32 0.2, %v600_v62  ;;  %v530_v4 = vmul.f32 %v1845_v30, %v1870_v2  ;;  %v603_v22 = vadd.f32 %v581_v16, %v547_v48  ;;  %v1187_v2 = vld [vmem:[%s2225_s6 + $0x38] sm:$0xff]  ;;  %v545_v46 = vadd.f32 %v529_v10, %v475_v20  ;;  %v1505_v20 = vld [vmem:[%s2222_s3 + $0x20] sm:$0xff] }
  0xc3   : > { %1203 = vperm.xlu2 %1553, %v1181_v21   ;;  %v1897_v34 = vpop.permute.xlu1 %512  ;;  %v476_v21 = vadd.f32 %v460_v42, %v406_v43  ;;  %v604_v24 = vadd.f32 %v581_v16, %v548_v49  ;;  %v647_v26 = vsel %vm615_vm4, %v599_v59, %v631_v13  ;;  %v465_v47 = vmul.f32 %v1788_v60, %v1824_v15  ;;  %v586_v57 = vpop.permute.xlu0 %585  ;;  %v1189_v60 = vld [vmem:[%s2225_s6 + $0x48] sm:$0xff] }
  0xc4   : > { %v648_v41 = vsel %vm616_vm5, %v600_v62, %v632_v14  ;;  %v466_v50 = vmul.f32 %v1790_v61, %v1824_v15  ;;  %v635_v51 = vmul.f32 0.2, %v603_v22  ;;  %vm619_vm8 = vcmp.gt.f32.partialorder %v603_v22, 0.0  ;;  %v1193_v16 = vld [vmem:[%s2225_s6 + $0x68] sm:$0xff] }
  0xc5   : > { %v636_v52 = vmul.f32 0.2, %v604_v24  ;;  %vm620_vm9 = vcmp.gt.f32.partialorder %v604_v24, 0.0  ;;  %v535_v54 = vmul.f32 %v1843_v29, %v1897_v34  ;;  %v536_v63 = vmul.f32 %v1845_v30, %v1897_v34  ;;  %v1190_v29 = vld [vmem:[%s2225_s6 + $0x50] sm:$0xff] }
  0xc6   : > { %v550_v58 = vadd.f32 %v534_v45, %v480_v35  ;;  %v481_v36 = vadd.f32 %v465_v47, %v1932_v1  ;;  %v482_v59 = vadd.f32 %v466_v50, %v1936_v17  ;;  %v651_v30 = vsel %vm619_vm8, %v603_v22, %v635_v51  ;;  %v1507_v22 = vld [vmem:[%s2222_s3 + $0x30] sm:$0xff] }
  0xc7   : > { %v652_v34 = vsel %vm620_vm9, %v604_v24, %v636_v52  ;;  %v847_v24 = vpop.permute.xlu2 %846 }
  0xc8   : > { %v606_v23 = vadd.f32 %v586_v57, %v550_v58  ;;  %v552_v8 = vadd.f32 %v536_v63, %v482_v59 }
  0xc9   : > { %1253 = vperm.xlu0 %1552, %v1191_v9   ;;  %v546_v9 = vadd.f32 %v530_v4, %v476_v21  ;;  %v1502_v21 = vld [vmem:[%s2222_s3 + $0x8] sm:$0xff] }
  0xca   : > { %1213 = vperm.xlu1 %1554, %v1183_v27   ;;  %v638_v48 = vmul.f32 0.2, %v606_v23  ;;  %vm622_vm13 = vcmp.gt.f32.partialorder %v606_v23, 0.0 }
  0xcb   : > { %1218 = vperm.xlu2 %1553, %v1184_v40   ;;  %v549_v40 = vadd.f32 %v533_v31, %v479_v33  ;;  %v1508_v33 = vld [vmem:[%s2222_s3 + $0x38] sm:$0xff] }
  0xcc   : > { %v566_v12 = vpop.permute.xlu1 %565  ;;  %v654_v10 = vsel %vm622_vm13, %v606_v23, %v638_v48 }
  0xcd   : > { %v597_v18 = vadd.f32 %v566_v12, %v541_v6  ;;  %v598_v19 = vadd.f32 %v566_v12, %v542_v7  ;;  %v605_v62 = vadd.f32 %v586_v57, %v549_v40  ;;  %v551_v7 = vadd.f32 %v535_v54, %v481_v36  ;;  %v1192_v12 = vld [vmem:[%s2225_s6 + $0x60] sm:$0xff] }
  0xcf   : > { %v629_v5 = vmul.f32 0.2, %v597_v18  ;;  %v630_v44 = vmul.f32 0.2, %v598_v19  ;;  %vm613_vm6 = vcmp.gt.f32.partialorder %v597_v18, 0.0  ;;  %vm614_vm7 = vcmp.gt.f32.partialorder %v598_v19, 0.0 }
  0xd0   : > { %v637_v1 = vmul.f32 0.2, %v605_v62  ;;  %vm621_vm12 = vcmp.gt.f32.partialorder %v605_v62, 0.0 }
  0xd1   : > { %1268 = vperm.xlu0 %1552, %v1194_v55   ;;  %v645_v25 = vsel %vm613_vm6, %v597_v18, %v629_v5  ;;  %v646_v37 = vsel %vm614_vm7, %v598_v19, %v630_v44  ;;  %v1195_v5 = vld [vmem:[%s2225_s6 + $0x78] sm:$0xff]  ;;  %v1501_v44 = vld [vmem:[%s2222_s3] sm:$0xff] }
  0xd2   : > { %1228 = vperm.xlu1 %1554, %v1186_v56   ;;  %v1961_v38 = vpack.c.bf16 %v647_v26, %v645_v25  ;;  %v1963_v39 = vpack.c.bf16 %v648_v41, %v646_v37  ;;  %v653_v18 = vsel %vm621_vm12, %v605_v62, %v637_v1  ;;  %v2034_v26 = vpop.permute.xlu2 %861  ;;  %v1504_v41 = vld [vmem:[%s2222_s3 + $0x18] sm:$0xff] }
  0xd3   : > { %1233 = vperm.xlu2 %1553, %v1187_v2   ;;  %v852_v2 = vpop.permute.xlu0 %851 }
  0xd4   : > { %v576_v27 = vpop.permute.xlu1 %575 }
  0xd5   : > { %v601_v53 = vadd.f32 %v576_v27, %v545_v46  ;;  %v602_v43 = vadd.f32 %v576_v27, %v546_v9 }
  0xd7   : > { %v633_v61 = vmul.f32 0.2, %v601_v53  ;;  %v634_v15 = vmul.f32 0.2, %v602_v43  ;;  %vm617_vm10 = vcmp.gt.f32.partialorder %v601_v53, 0.0  ;;  %vm618_vm11 = vcmp.gt.f32.partialorder %v602_v43, 0.0 }
  0xd9   : > { %v649_v0 = vsel %vm617_vm10, %v601_v53, %v633_v61  ;;  %v650_v3 = vsel %vm618_vm11, %v602_v43, %v634_v15 }
  0xda   : > { %1243 = vperm.xlu1 %1554, %v1189_v60   ;;  %v661_v42 = vpack.c.bf16 %v651_v30, %v649_v0  ;;  %v662_v6 = vpack.c.bf16 %v652_v34, %v650_v3 }
  0xdb   : > { %1248 = vperm.xlu2 %1553, %v1190_v29   ;;  %v2036_v37 = vpop.permute.xlu0 %866 }
  0xdc   : > { %v591_v11 = vpop.permute.xlu1 %590 }
  0xdd   : > { %v607_v17 = vadd.f32 %v591_v11, %v551_v7  ;;  %v608_v49 = vadd.f32 %v591_v11, %v552_v8 }
  0xdf   : > { %v639_v13 = vmul.f32 0.2, %v607_v17  ;;  %v640_v14 = vmul.f32 0.2, %v608_v49  ;;  %vm623_vm14 = vcmp.gt.f32.partialorder %v607_v17, 0.0  ;;  %vm624_vm15 = vcmp.gt.f32.partialorder %v608_v49, 0.0 }
  0xe1   : > { %v655_v19 = vsel %vm623_vm14, %v607_v17, %v639_v13  ;;  %v656_v4 = vsel %vm624_vm15, %v608_v49, %v640_v14 }
  0xe2   : > { %1258 = vperm.xlu1 %1554, %v1192_v12   ;;  %v663_v55 = vpack.c.bf16 %v655_v19, %v653_v18  ;;  %v664_v56 = vpack.c.bf16 %v656_v4, %v654_v10 }
  0xe3   : > { %1263 = vperm.xlu2 %1553, %v1193_v16  }
  0xe4   : > { %734 = vmatpush.bf16.msra.mxu0 %v663_v55  ;;  %1509 = vmatpush.bf16.msra.mxu2 %v663_v55  ;;  %v2032_v25 = vpop.permute.xlu1 %856 }
  0xe5   : > { %783 = vmatpush.bf16.msra.mxu1 %v664_v56  ;;  %1513 = vmatpush.bf16.msra.mxu3 %v664_v56 }
  0xe8   : > { %735 = vmatpush.bf16.msra.mxu0 %v661_v42  ;;  %1510 = vmatpush.bf16.msra.mxu2 %v661_v42 }
  0xe9   : > { %784 = vmatpush.bf16.msra.mxu1 %v662_v6  ;;  %1514 = vmatpush.bf16.msra.mxu3 %v662_v6 }
  0xea   : > { %1273 = vperm.xlu1 %1554, %v1195_v5  }
  0xec   : > { %736 = vmatpush.bf16.msra.mxu0 %v1961_v38  ;;  %1511 = vmatpush.bf16.msra.mxu2 %v1961_v38  ;;  %v2044_v35 = vpop.permute.xlu1 %871  ;;  %v2050_v38 = vpop.permute.xlu2 %876 }
  0xed   : > { %785 = vmatpush.bf16.msra.mxu1 %v1963_v39  ;;  %1515 = vmatpush.bf16.msra.mxu3 %v1963_v39  ;;  %v2052_v39 = vpop.permute.xlu0 %881 }
  0xf0   : > { %737 = vmatpush.bf16.msra.mxu0 %v1889_v28  ;;  %1512 = vmatpush.bf16.msra.mxu2 %v1889_v28  ;;  %v1506_v28 = vld [vmem:[%s2222_s3 + $0x28] sm:$0xff] }
  0xf1   : > { %786 = vmatpush.bf16.msra.mxu1 %v1891_v32  ;;  %1516 = vmatpush.bf16.msra.mxu3 %v1891_v32  ;;  %v1503_v32 = vld [vmem:[%s2222_s3 + $0x10] sm:$0xff] }
  0xf3   : > { %1482 = vmatmul.msk.bf16.vlgmr.msra.gmra.mxu0 %vm705_vm0, %v1501_v44  ;;  %1486 = vmatmul.msk.bf16.vlgmr.msra.gmra.mxu2 %vm705_vm0, %v1505_v20 }
  0xf4   : > { %1490 = vmatmul.msk.bf16.vlgmr.msra.gmra.mxu1 %vm705_vm0, %v1501_v44  ;;  %1494 = vmatmul.msk.bf16.vlgmr.msra.gmra.mxu3 %vm705_vm0, %v1505_v20  ;;  %v887_v31 = vpop.permute.xlu1 %886  ;;  %v892_v45 = vpop.permute.xlu2 %891 }
  0xf5   : > { %v2054_v46 = vpop.permute.xlu0 %896 }
  0xfc   : > { %v2056_v9 = vpop.permute.xlu1 %901  ;;  %v2058_v47 = vpop.permute.xlu2 %906 }
  0xfd   : > { %v2060_v50 = vpop.permute.xlu0 %911 }
 0x103   : > { %1483 = vmatmul.msk.bf16.gmra.mxu0 %vm705_vm0, %v1502_v21  ;;  %1487 = vmatmul.msk.bf16.gmra.mxu2 %vm705_vm0, %v1506_v28 }
 0x104   : > { %1491 = vmatmul.msk.bf16.gmra.mxu1 %vm705_vm0, %v1502_v21  ;;  %1495 = vmatmul.msk.bf16.gmra.mxu3 %vm705_vm0, %v1506_v28  ;;  %v2062_v51 = vpop.permute.xlu1 %916  ;;  %v2064_v52 = vpop.permute.xlu2 %921 }
 0x105   : > { %v975_v27 = vpop.permute.xlu0 %974 }
 0x10c   : > { %v980_v53 = vpop.permute.xlu1 %979  ;;  %v2066_v43 = vpop.permute.xlu2 %984 }
 0x10d   : > { %v2068_v54 = vpop.permute.xlu0 %989 }
 0x113   : > { %1484 = vmatmul.msk.bf16.gmra.mxu0 %vm705_vm0, %v1503_v32  ;;  %1488 = vmatmul.msk.bf16.gmra.mxu2 %vm705_vm0, %v1507_v22 }
 0x114   : > { %1492 = vmatmul.msk.bf16.gmra.mxu1 %vm705_vm0, %v1503_v32  ;;  %1496 = vmatmul.msk.bf16.gmra.mxu3 %vm705_vm0, %v1507_v22  ;;  %v2070_v63 = vpop.permute.xlu1 %994  ;;  %v2072_v57 = vpop.permute.xlu2 %999 }
 0x115   : > { %v2074_v40 = vpop.permute.xlu0 %1004 }
 0x11c   : > { %v2076_v58 = vpop.permute.xlu1 %1009  ;;  %v1015_v60 = vpop.permute.xlu2 %1014 }
 0x11d   : > { %v1020_v61 = vpop.permute.xlu0 %1019 }
 0x123   : > { %1485 = vmatmul.msk.bf16.gmra.mxu0 %vm705_vm0, %v1504_v41  ;;  %1489 = vmatmul.msk.bf16.gmra.mxu2 %vm705_vm0, %v1508_v33 }
 0x124   : > { %1493 = vmatmul.msk.bf16.gmra.mxu1 %vm705_vm0, %v1504_v41  ;;  %1497 = vmatmul.msk.bf16.gmra.mxu3 %vm705_vm0, %v1508_v33  ;;  %v2078_v15 = vpop.permute.xlu1 %1024  ;;  %v2080_v36 = vpop.permute.xlu2 %1029 }
 0x125   : > { %v2082_v59 = vpop.permute.xlu0 %1034 }
 0x12c   : > { %v2084_v34 = vpop.permute.xlu1 %1039  ;;  %v2086_v62 = vpop.permute.xlu2 %1044 }
 0x12d   : > { %2229 = vst [vmem:[#allocation2_spill] sm:$0xff] %v2086_v62  ;;  %v2088_v0 = vpop.permute.xlu0 %1049 }
 0x12e   : > { %2230 = vst [vmem:[#allocation3_spill] sm:$0xff] %v2088_v0 }
 0x134   : > { %v2090_v7 = vpop.permute.xlu1 %1198  ;;  %v1204_v1 = vpop.permute.xlu2 %1203 }
 0x135   : > { %v2092_v17 = vpop.permute.xlu0 %1208 }
 0x13c   : > { %v2094_v55 = vpop.permute.xlu1 %1213  ;;  %v2096_v33 = vpop.permute.xlu2 %1218 }
 0x170   : > { %v739_v29 = vpop.f32.mrf.mxu0 }
 0x171   : > { %v788_v30 = vpop.f32.mrf.mxu1  ;;  %v924_v12 = vmul.f32 %v847_v24, %v739_v29  ;;  %v2098_v29 = vpop.permute.xlu0 %1223 }
 0x172   : > { %v925_v18 = vmul.f32 %v847_v24, %v788_v30 }
 0x173   : > { %v1052_v16 = vadd.f32 %v975_v27, %v924_v12 }
 0x174   : > { %v1053_v32 = vadd.f32 %v975_v27, %v925_v18  ;;  %v2105_v18 = vpop.permute.xlu1 %1228 }
 0x175   : > { %v1116_v28 = vmul.f32 0.2, %v1052_v16  ;;  %vm1084_vm1 = vcmp.gt.f32.partialorder %v1052_v16, 0.0 }
 0x176   : > { %v759_v23 = vpop.f32.mrf.mxu2  ;;  %vm1085_vm4 = vcmp.gt.f32.partialorder %v1053_v32, 0.0 }
 0x177   : > { %v808_v3 = vpop.f32.mrf.mxu3  ;;  %v940_v19 = vmul.f32 %v887_v31, %v759_v23 }
 0x178   : > { %v741_v42 = vpop.f32.mrf.mxu0  ;;  %v941_v10 = vmul.f32 %v887_v31, %v808_v3  ;;  %v1148_v3 = vsel %vm1084_vm1, %v1052_v16, %v1116_v28 }
 0x179   : > { %v790_v6 = vpop.f32.mrf.mxu1  ;;  %v926_v13 = vmul.f32 %v852_v2, %v741_v42  ;;  %v1068_v22 = vadd.f32 %v1015_v60, %v940_v19  ;;  %v1117_v42 = vmul.f32 0.2, %v1053_v32 }
 0x17a   : > { %v927_v14 = vmul.f32 %v852_v2, %v790_v6  ;;  %v1069_v41 = vadd.f32 %v1015_v60, %v941_v10 }
 0x17b   : > { %v1054_v5 = vadd.f32 %v980_v53, %v926_v13  ;;  %v1132_v27 = vmul.f32 0.2, %v1068_v22  ;;  %vm1100_vm5 = vcmp.gt.f32.partialorder %v1068_v22, 0.0  ;;  %v1149_v10 = vsel %vm1085_vm4, %v1053_v32, %v1117_v42 }
 0x17c   : > { %v1055_v44 = vadd.f32 %v980_v53, %v927_v14  ;;  %v1133_v6 = vmul.f32 0.2, %v1069_v41  ;;  %vm1101_vm6 = vcmp.gt.f32.partialorder %v1069_v41, 0.0 }
 0x17d   : > { %v1118_v2 = vmul.f32 0.2, %v1054_v5  ;;  %vm1086_vm2 = vcmp.gt.f32.partialorder %v1054_v5, 0.0  ;;  %v1164_v28 = vsel %vm1100_vm5, %v1068_v22, %v1132_v27 }
 0x17e   : > { %v761_v8 = vpop.f32.mrf.mxu2  ;;  %v1119_v31 = vmul.f32 0.2, %v1055_v44  ;;  %vm1087_vm3 = vcmp.gt.f32.partialorder %v1055_v44, 0.0  ;;  %v1165_v0 = vsel %vm1101_vm6, %v1069_v41, %v1133_v6 }
 0x17f   : > { %v810_v11 = vpop.f32.mrf.mxu3  ;;  %v942_v30 = vmul.f32 %v892_v45, %v761_v8 }
 0x180   : > { %v744_v48 = vpop.f32.mrf.mxu0  ;;  %v943_v23 = vmul.f32 %v892_v45, %v810_v11  ;;  %v1151_v14 = vsel %vm1087_vm3, %v1055_v44, %v1119_v31 }
 0x181   : > { %v793_v49 = vpop.f32.mrf.mxu1  ;;  %v928_v24 = vmul.f32 %v2032_v25, %v744_v48  ;;  %v1150_v48 = vsel %vm1086_vm2, %v1054_v5, %v1118_v2  ;;  %v1070_v8 = vadd.f32 %v1020_v61, %v942_v30  ;;  %v1279_v5 = vmul.f32 %v1204_v1, %v1151_v14  ;;  %v2112_v30 = vpop.permute.xlu2 %1233 }
 0x182   : > { %v929_v53 = vmul.f32 %v2032_v25, %v793_v49  ;;  %v1071_v45 = vadd.f32 %v1020_v61, %v943_v23  ;;  %v1276_v25 = vmul.f32 %v2090_v7, %v1148_v3  ;;  %v1278_v62 = vmul.f32 %v1204_v1, %v1150_v48 }
 0x183   : > { %v1056_v12 = vadd.f32 %v2066_v43, %v928_v24  ;;  %vm1102_vm7 = vcmp.gt.f32.partialorder %v1070_v8, 0.0  ;;  %v1134_v2 = vmul.f32 0.2, %v1070_v8 }
 0x184   : > { %v1057_v49 = vadd.f32 %v2066_v43, %v929_v53  ;;  %v1135_v31 = vmul.f32 0.2, %v1071_v45  ;;  %v1239_v43 = vpop.permute.xlu0 %1238  ;;  %vm1103_vm9 = vcmp.gt.f32.partialorder %v1071_v45, 0.0  ;;  %v1308_v27 = vadd.f32 %v1278_v62, %v1276_v25 }
 0x185   : > { %v1120_v44 = vmul.f32 0.2, %v1056_v12  ;;  %vm1088_vm8 = vcmp.gt.f32.partialorder %v1056_v12, 0.0  ;;  %v2117_v41 = vmul.f32 %v1239_v43, %v1164_v28 }
 0x186   : > { %v764_v4 = vpop.f32.mrf.mxu2  ;;  %vm1089_vm10 = vcmp.gt.f32.partialorder %v1057_v49, 0.0 }
 0x187   : > { %v813_v56 = vpop.f32.mrf.mxu3  ;;  %v944_v16 = vmul.f32 %v2054_v46, %v764_v4  ;;  %v1121_v4 = vmul.f32 0.2, %v1057_v49  ;;  %v1152_v23 = vsel %vm1088_vm8, %v1056_v12, %v1120_v44 }
 0x188   : > { %v746_v20 = vpop.f32.mrf.mxu0  ;;  %v945_v22 = vmul.f32 %v2054_v46, %v813_v56  ;;  %v1166_v46 = vsel %vm1102_vm7, %v1070_v8, %v1134_v2 }
 0x189   : > { %v795_v21 = vpop.f32.mrf.mxu1  ;;  %v930_v24 = vmul.f32 %v2034_v26, %v746_v20  ;;  %v1072_v32 = vadd.f32 %v2078_v15, %v944_v16  ;;  %v1277_v20 = vmul.f32 %v2090_v7, %v1149_v10  ;;  %v1167_v7 = vsel %vm1103_vm9, %v1071_v45, %v1135_v31  ;;  %v1244_v10 = vpop.permute.xlu1 %1243 }
 0x18a   : > { %v931_v61 = vmul.f32 %v2034_v26, %v795_v21  ;;  %v2120_v21 = vmul.f32 %v1239_v43, %v1165_v0  ;;  %v1153_v48 = vsel %vm1089_vm10, %v1057_v49, %v1121_v4  ;;  %v1073_v16 = vadd.f32 %v2078_v15, %v945_v22  ;;  %v2146_v31 = vpop.permute.xlu2 %1248 }
 0x18b   : > { %v1058_v26 = vadd.f32 %v2068_v54, %v930_v24  ;;  %v1329_v6 = vadd.f32 %v1279_v5, %v1277_v20  ;;  %v1136_v14 = vmul.f32 0.2, %v1072_v32  ;;  %vm1104_vm11 = vcmp.gt.f32.partialorder %v1072_v32, 0.0 }
 0x18c   : > { %v1059_v53 = vadd.f32 %v2068_v54, %v931_v61  ;;  %v1280_v54 = vmul.f32 %v2092_v17, %v1152_v23  ;;  %v2134_v49 = vmul.f32 %v1244_v10, %v1166_v46  ;;  %v1281_v15 = vmul.f32 %v2092_v17, %v1153_v48 }
 0x18d   : > { %vm1090_vm12 = vcmp.gt.f32.partialorder %v1058_v26, 0.0  ;;  %v1168_v28 = vsel %vm1104_vm11, %v1072_v32, %v1136_v14  ;;  %v1137_v24 = vmul.f32 0.2, %v1073_v16  ;;  %vm1105_vm14 = vcmp.gt.f32.partialorder %v1073_v16, 0.0 }
 0x18e   : > { %v766_v60 = vpop.f32.mrf.mxu2  ;;  %v1123_v62 = vmul.f32 0.2, %v1059_v53  ;;  %vm1091_vm13 = vcmp.gt.f32.partialorder %v1059_v53, 0.0  ;;  %v1309_v44 = vadd.f32 %v1308_v27, %v1280_v54  ;;  %v2153_v22 = vmul.f32 %v2146_v31, %v1168_v28 }
 0x18f   : > { %v2103_v13 = vpop.f32.mrf.mxu3  ;;  %v946_v25 = vmul.f32 %v2056_v9, %v766_v60 }
 0x190   : > { %v749_v11 = vpop.f32.mrf.mxu0  ;;  %v947_v61 = vmul.f32 %v2056_v9, %v2103_v13  ;;  %v1155_v17 = vsel %vm1091_vm13, %v1059_v53, %v1123_v62  ;;  %v2156_v13 = vsel %vm1105_vm14, %v1073_v16, %v1137_v24 }
 0x191   : > { %v798_v19 = vpop.f32.mrf.mxu1  ;;  %v932_v3 = vmul.f32 %v2036_v37, %v749_v11  ;;  %v1122_v11 = vmul.f32 0.2, %v1058_v26  ;;  %v1283_v27 = vmul.f32 %v2094_v55, %v1155_v17 }
 0x192   : > { %v933_v0 = vmul.f32 %v2036_v37, %v798_v19  ;;  %v2138_v19 = vmul.f32 %v1244_v10, %v1167_v7  ;;  %v1075_v46 = vadd.f32 %v2080_v36, %v947_v61 }
 0x193   : > { %v1060_v8 = vadd.f32 %v2070_v63, %v932_v3  ;;  %v1154_v60 = vsel %vm1090_vm12, %v1058_v26, %v1122_v11 }
 0x194   : > { %v1061_v5 = vadd.f32 %v2070_v63, %v933_v0  ;;  %v1330_v63 = vadd.f32 %v1329_v6, %v1281_v15  ;;  %v1282_v26 = vmul.f32 %v2094_v55, %v1154_v60  ;;  %vm1107_vm4 = vcmp.gt.f32.partialorder %v1075_v46, 0.0 }
 0x195   : > { %v1124_v43 = vmul.f32 0.2, %v1060_v8  ;;  %vm1092_vm15 = vcmp.gt.f32.partialorder %v1060_v8, 0.0 }
 0x196   : > { %v769_v1 = vpop.f32.mrf.mxu2  ;;  %v1125_v23 = vmul.f32 0.2, %v1061_v5  ;;  %vm1093_vm0 = vcmp.gt.f32.partialorder %v1061_v5, 0.0 }
 0x197   : > { %v2124_v42 = vpop.f32.mrf.mxu3  ;;  %v1156_v7 = vsel %vm1092_vm15, %v1060_v8, %v1124_v43  ;;  %v948_v48 = vmul.f32 %v2058_v47, %v769_v1 }
 0x198   : > { %v751_v56 = vpop.f32.mrf.mxu0  ;;  %v1284_v11 = vmul.f32 %v2096_v33, %v1156_v7  ;;  %v949_v10 = vmul.f32 %v2058_v47, %v2124_v42 }
 0x199   : > { %v800_v12 = vpop.f32.mrf.mxu1  ;;  %v934_v45 = vmul.f32 %v2044_v35, %v751_v56  ;;  %v1076_v8 = vadd.f32 %v2082_v59, %v948_v48 }
 0x19a   : > { %v935_v37 = vmul.f32 %v2044_v35, %v800_v12  ;;  %v1074_v35 = vadd.f32 %v2080_v36, %v946_v25  ;;  %v1157_v12 = vsel %vm1093_vm0, %v1061_v5, %v1125_v23  ;;  %v1139_v36 = vmul.f32 0.2, %v1075_v46 }
 0x19b   : > { %v1062_v4 = vadd.f32 %v2072_v57, %v934_v45  ;;  %v1310_v25 = vadd.f32 %v1309_v44, %v1282_v26  ;;  %vm1108_vm7 = vcmp.gt.f32.partialorder %v1076_v8, 0.0 }
 0x19c   : > { %v1063_v20 = vadd.f32 %v2072_v57, %v935_v37  ;;  %vm1106_vm1 = vcmp.gt.f32.partialorder %v1074_v35, 0.0  ;;  %v1138_v0 = vmul.f32 0.2, %v1074_v35  ;;  %v1331_v37 = vadd.f32 %v1330_v63, %v1283_v27 }
 0x19d   : > { %v1126_v56 = vmul.f32 0.2, %v1062_v4  ;;  %vm1094_vm2 = vcmp.gt.f32.partialorder %v1062_v4, 0.0  ;;  %v1171_v61 = vsel %vm1107_vm4, %v1075_v46, %v1139_v36  ;;  %v1311_v17 = vadd.f32 %v1310_v25, %v1284_v11  ;;  %v1259_v25 = vpop.permute.xlu1 %1258 }
 0x19e   : > { %v2144_v2 = vpop.f32.mrf.mxu2  ;;  %v1127_v14 = vmul.f32 0.2, %v1063_v20  ;;  %vm1095_vm3 = vcmp.gt.f32.partialorder %v1063_v20, 0.0  ;;  %v1170_v28 = vsel %vm1106_vm1, %v1074_v35, %v1138_v0  ;;  %vm1353_vm1 = vcmask 1040384  }
 0x19f   : > { %v2150_v32 = vpop.f32.mrf.mxu3  ;;  %v1158_v62 = vsel %vm1094_vm2, %v1062_v4, %v1126_v56 }
 0x1a0   : > { %v754_v9 = vpop.f32.mrf.mxu0  ;;  %v1159_v45 = vsel %vm1095_vm3, %v1063_v20, %v1127_v14  ;;  %v1286_v47 = vmul.f32 %v2098_v29, %v1158_v62  ;;  %v1254_v14 = vpop.permute.xlu0 %1253 }
 0x1a1   : > { %v936_v53 = vmul.f32 %v2050_v38, %v754_v9  ;;  %v803_v3 = vpop.f32.mrf.mxu1  ;;  %v1287_v43 = vmul.f32 %v2098_v29, %v1159_v45  ;;  %v950_v9 = vmul.f32 %v2060_v50, %v2144_v2  ;;  %v1299_v36 = vmul.f32 %v1254_v14, %v1171_v61 }
 0x1a2   : > { %v937_v6 = vmul.f32 %v2050_v38, %v803_v3  ;;  %v1312_v23 = vadd.f32 %v1311_v17, %v1286_v47  ;;  %v1140_v3 = vmul.f32 0.2, %v1076_v8 }
 0x1a3   : > { %v1064_v57 = vadd.f32 %v2074_v40, %v936_v53 }
 0x1a4   : > { %v1065_v16 = vadd.f32 %v2074_v40, %v937_v6  ;;  %v1285_v40 = vmul.f32 %v2096_v33, %v1157_v12  ;;  %v1077_v33 = vadd.f32 %v2082_v59, %v949_v10  ;;  %v951_v59 = vmul.f32 %v2060_v50, %v2150_v32 }
 0x1a5   : > { %v1128_v55 = vmul.f32 0.2, %v1064_v57  ;;  %vm1096_vm5 = vcmp.gt.f32.partialorder %v1064_v57, 0.0  ;;  %v1172_v10 = vsel %vm1108_vm7, %v1076_v8, %v1140_v3 }
 0x1a6   : > { %v1129_v54 = vmul.f32 0.2, %v1065_v16  ;;  %v774_v38 = vpop.f32.mrf.mxu2  ;;  %vm1097_vm6 = vcmp.gt.f32.partialorder %v1065_v16, 0.0  ;;  %v1332_v63 = vadd.f32 %v1331_v37, %v1285_v40  ;;  %v1079_v0 = vadd.f32 %v2084_v34, %v951_v59  ;;  %v1274_v59 = vpop.permute.xlu1 %1273 }
 0x1a7   : > { %v823_v1 = vpop.f32.mrf.mxu3  ;;  %v1160_v24 = vsel %vm1096_vm5, %v1064_v57, %v1128_v55  ;;  %v952_v46 = vmul.f32 %v2062_v51, %v774_v38  ;;  %v1078_v57 = vadd.f32 %v2084_v34, %v950_v9  ;;  %v1141_v62 = vmul.f32 0.2, %v1077_v33 }
 0x1a8   : > { %v756_v15 = vpop.f32.mrf.mxu0  ;;  %v1161_v42 = vsel %vm1097_vm6, %v1065_v16, %v1129_v54  ;;  %v1288_v35 = vmul.f32 %v2105_v18, %v1160_v24  ;;  %v1333_v27 = vadd.f32 %v1332_v63, %v1287_v43  ;;  %v953_v2 = vmul.f32 %v2062_v51, %v823_v1  ;;  %v2231_v54 = vld [vmem:[#allocation2_spill] sm:$0xff] }
 0x1a9   : > { %v938_v5 = vmul.f32 %v2052_v39, %v756_v15  ;;  %v805_v60 = vpop.f32.mrf.mxu1  ;;  %v1289_v26 = vmul.f32 %v2105_v18, %v1161_v42  ;;  %v1297_v16 = vmul.f32 %v2146_v31, %v2156_v13  ;;  %v1298_v51 = vmul.f32 %v1254_v14, %v1170_v28  ;;  %v2232_v13 = vld [vmem:[#allocation3_spill] sm:$0xff] }
 0x1aa   : > { %v939_v44 = vmul.f32 %v2052_v39, %v805_v60  ;;  %v1313_v7 = vadd.f32 %v1312_v23, %v1288_v35  ;;  %v1080_v38 = vadd.f32 %v2231_v54, %v952_v46  ;;  %vm1109_vm10 = vcmp.gt.f32.partialorder %v1077_v33, 0.0  ;;  %v1269_v35 = vpop.permute.xlu0 %1268 }
 0x1ab   : > { %v1066_v4 = vadd.f32 %v2076_v58, %v938_v5  ;;  %v1334_v48 = vadd.f32 %v1333_v27, %v1289_v26  ;;  %v1142_v31 = vmul.f32 0.2, %v1078_v57  ;;  %vm1110_vm11 = vcmp.gt.f32.partialorder %v1078_v57, 0.0 }
 0x1ac   : > { %v1067_v20 = vadd.f32 %v2076_v58, %v939_v44  ;;  %v1300_v37 = vmul.f32 %v1259_v25, %v1172_v10  ;;  %vm1111_vm12 = vcmp.gt.f32.partialorder %v1079_v0, 0.0  ;;  %v1144_v8 = vmul.f32 0.2, %v1080_v38  ;;  %v1264_v44 = vpop.permute.xlu2 %1263 }
 0x1ad   : > { %vm1098_vm8 = vcmp.gt.f32.partialorder %v1066_v4, 0.0  ;;  %v1130_v39 = vmul.f32 0.2, %v1066_v4  ;;  %v1173_v24 = vsel %vm1109_vm10, %v1077_v33, %v1141_v62  ;;  %vm1112_vm13 = vcmp.gt.f32.partialorder %v1080_v38, 0.0 }
 0x1ae   : > { %vm1099_vm9 = vcmp.gt.f32.partialorder %v1067_v20, 0.0  ;;  %v1131_v29 = vmul.f32 0.2, %v1067_v20  ;;  %v776_v53 = vpop.f32.mrf.mxu2  ;;  %v1174_v60 = vsel %vm1110_vm11, %v1078_v57, %v1142_v31  ;;  %v1301_v17 = vmul.f32 %v1259_v25, %v1173_v24 }
 0x1af   : > { %v1162_v6 = vsel %vm1098_vm8, %v1066_v4, %v1130_v39  ;;  %v825_v58 = vpop.f32.mrf.mxu3  ;;  %v954_v32 = vmul.f32 %v2064_v52, %v776_v53  ;;  %v1176_v43 = vsel %vm1112_vm13, %v1080_v38, %v1144_v8  ;;  %v1302_v63 = vmul.f32 %v1264_v44, %v1174_v60 }
 0x1b0   : > { %v1290_v18 = vmul.f32 %v2112_v30, %v1162_v6  ;;  %v1163_v56 = vsel %vm1099_vm9, %v1067_v20, %v1131_v29  ;;  %v955_v55 = vmul.f32 %v2064_v52, %v825_v58  ;;  %v1143_v52 = vmul.f32 0.2, %v1079_v0 }
 0x1b1   : > { %v1291_v50 = vmul.f32 %v2112_v30, %v1163_v56  ;;  %v1081_v30 = vadd.f32 %v2231_v54, %v953_v2  ;;  %v1082_v40 = vadd.f32 %v2232_v13, %v954_v32  ;;  %v1304_v26 = vmul.f32 %v1269_v35, %v1176_v43 }
 0x1b2   : > { %v1314_v12 = vadd.f32 %v1313_v7, %v1290_v18  ;;  %v1083_v15 = vadd.f32 %v2232_v13, %v955_v55  ;;  %v1175_v47 = vsel %vm1111_vm12, %v1079_v0, %v1143_v52 }
 0x1b3   : > { %v1335_v11 = vadd.f32 %v1334_v48, %v1291_v50  ;;  %vm1113_vm14 = vcmp.gt.f32.partialorder %v1081_v30, 0.0  ;;  %v1146_v61 = vmul.f32 0.2, %v1082_v40  ;;  %vm1114_vm15 = vcmp.gt.f32.partialorder %v1082_v40, 0.0 }
 0x1b4   : > { %v1315_v1 = vadd.f32 %v1314_v12, %v2117_v41  ;;  %v1145_v41 = vmul.f32 0.2, %v1081_v30  ;;  %vm1115_vm0 = vcmp.gt.f32.partialorder %v1083_v15, 0.0  ;;  %v1303_v20 = vmul.f32 %v1264_v44, %v1175_v47 }
 0x1b5   : > { %v1336_v34 = vadd.f32 %v1335_v11, %v2120_v21  ;;  %v1178_v9 = vsel %vm1114_vm15, %v1082_v40, %v1146_v61  ;;  %v1356_v12 = vlaneseq }
 0x1b6   : > { %v1316_v45 = vadd.f32 %v1315_v1, %v2134_v49  ;;  %v1147_v49 = vmul.f32 0.2, %v1083_v15  ;;  %v1306_v3 = vmul.f32 %v1274_v59, %v1178_v9 }
 0x1b7   : > { %v1337_v28 = vadd.f32 %v1336_v34, %v2138_v19  ;;  %v1177_v19 = vsel %vm1113_vm14, %v1081_v30, %v1145_v41  ;;  %vm1358_vm2 = vcmp.lt.s32.totalorder %v1356_v12, 256 }
 0x1b8   : > { %v1317_v5 = vadd.f32 %v1316_v45, %v2153_v22  ;;  %v1179_v23 = vsel %vm1115_vm0, %v1083_v15, %v1147_v49  ;;  %v1305_v29 = vmul.f32 %v1269_v35, %v1177_v19 }
 0x1b9   : > { %v1338_v21 = vadd.f32 %v1337_v28, %v1297_v16  ;;  %v1307_v46 = vmul.f32 %v1274_v59, %v1179_v23 }
 0x1ba   : > { %v1318_v42 = vadd.f32 %v1317_v5, %v1298_v51 }
 0x1bb   : > { %v1339_v4 = vadd.f32 %v1338_v21, %v1299_v36 }
 0x1bc   : > { %v1319_v33 = vadd.f32 %v1318_v42, %v1300_v37 }
 0x1bd   : > { %v1340_v22 = vadd.f32 %v1339_v4, %v1301_v17 }
 0x1be   : > { %v1320_v39 = vadd.f32 %v1319_v33, %v1302_v63 }
 0x1bf   : > { %v1341_v53 = vadd.f32 %v1340_v22, %v1303_v20 }
 0x1c0   : > { %v1321_v27 = vadd.f32 %v1320_v39, %v1304_v26 }
 0x1c1   : > { %v1342_v6 = vadd.f32 %v1341_v53, %v1305_v29 }
 0x1c2   : > { %v1322_v58 = vadd.f32 %v1321_v27, %v1306_v3 }
 0x1c3   : > { %v1343_v7 = vadd.f32 %v1342_v6, %v1307_v46 }
 0x1c4   : > { %v1323_v2 = vrot.slane %v1322_v58, 4 }
 0x1c5   : > { %v1344_v18 = vrot.slane %v1343_v7, 4 }
 0x1c6   : > { %v1324_v56 = vadd.f32 %v1323_v2, %v1322_v58 }
 0x1c7   : > { %v1345_v57 = vadd.f32 %v1344_v18, %v1343_v7 }
 0x1c8   : > { %v1325_v48 = vrot.slane %v1324_v56, 2 }
 0x1c9   : > { %v1346_v50 = vrot.slane %v1345_v57, 2 }
 0x1ca   : > { %v1326_v32 = vadd.f32 %v1325_v48, %v1324_v56 }
 0x1cb   : > { %v1347_v14 = vadd.f32 %v1346_v50, %v1345_v57 }
 0x1cc   : > { %v1327_v16 = vrot.slane %v1326_v32, 1 }
 0x1cd   : > { %v1348_v0 = vrot.slane %v1347_v14, 1 }
 0x1ce   : > { %v1328_v51 = vadd.f32 %v1327_v16, %v1326_v32 }
 0x1cf   : > { %v1349_v55 = vadd.f32 %v1348_v0, %v1347_v14 }
 0x1d1   : > { %v1352_v36 = vrot.slane %v1349_v55, 7 }
 0x1d3   : > { %v1354_v54 = vsel %vm1353_vm1, %v1328_v51, %v1352_v36 }
 0x1d4   : > { %1360 = vst.msk [vmem:[%s314_s23] sm:$0x3] %vm1358_vm2, %v1354_v54 }
 0x1d5 PF: > { %s17_s26 = sadd.s32 1, %s1577_s26   ;;  %s2233_s24 = smov %s1573_s25 }
 0x1d6   : > { %p14_p5 = scmp.ge.s32.totalorder %s17_s26, 4   ;;  %s2234_s25 = smov %s2236_s27 }
 0x1d8   :  { %16 = sbr.rel (!%p14_p5) target bundleno = 2 (0x2), region = 78 }

</bundles_post_ra>
